<compile_context>
chip_gen: v7x
topology: tpu7x:2x2x1
jax: 0.10.0
libtpu: 0.0.40
codegen_flags: <defaults>
</compile_context>

<pallas_src>
import functools

import jax
import jax.numpy as jnp
from jax.experimental import pallas as pl
from jax.experimental.pallas import tpu as pltpu

EPS = 1e-5  # PyTorch BatchNorm2d default eps
_LANE = 128


def _round_up(x, m):
    return (x + m - 1) // m * m


def _vmem_limits():
    """(scoped VMEM request, tile-sizing budget) derived from the local chip."""
    try:
        cap = pltpu.get_tpu_info().vmem_capacity_bytes
    except Exception:
        cap = 64 * 1024 * 1024
    limit = (cap * 3) // 4          # leave headroom below physical VMEM
    budget = (limit * 3) // 5       # headroom for compiler temporaries / relayouts
    return int(limit), int(budget)


def _pick_band_rows(H, W, Cin, Cp, budget):
    """Largest divisor of H whose pass-1 double-buffered working set fits budget."""
    per_row = (4 * (W + 2) * Cin * 2 // 2   # bf16 band rows, x2 buffers
               + 2 * W * Cin                # live tap-slice temporaries (bf16)
               + 4 * W * Cp                 # bf16 y tile, x2 buffers
               + 4 * W * Cp)                # f32 accumulator
    fixed = (36 * Cin * Cp                  # bf16 weights, x2 buffers
             + 8 * (W + 2) * Cin            # the 2 halo rows
             + 128 * Cp                     # stat partial outputs
             + (1 << 20))                   # slack
    cap = max(1, (budget - fixed) // per_row)
    cap = min(cap, max(1, H // 2))          # keep >=2 bands: pipelining + v7x megacore
    th = 1
    for t in range(1, H + 1):
        if H % t == 0 and t <= cap:
            th = t
    return th


def _pick_bn_rows(M, Cp, budget):
    """Row tile for the purely HBM-bound BN+ReLU pass (sized independently)."""
    per_row = 12 * Cp                       # bf16 in + bf16 out (x2 buffers) + f32 temp
    bm = max(8, budget // per_row)
    bm = min(bm, _round_up(M, 8))
    return max(8, (bm // 8) * 8)


def _conv_stats_kernel(band_ref, w_ref, y_ref, s_ref, q_ref, *, th, W, Cin, Cp, g):
    """Pass 1: on-chip 3x3 taps -> 9 accumulating MXU dots -> y (bf16) + f32 stat partials."""
    band = band_ref[0]                                   # (th+2, W+2, Cin) bf16
    w = w_ref[...]                                       # (3, 3, Cin, Cp) bf16
    acc = jnp.zeros((th * W, Cp), jnp.float32)
    for kh in range(3):
        for kw in range(3):
            tap = band[kh:kh + th, kw:kw + W, :].reshape(th * W, Cin)
            acc = acc + jnp.dot(tap, w[kh, kw], preferred_element_type=jnp.float32)

    y_ref[0] = acc.astype(y_ref.dtype)

    # Sublane-group partial sums: VPU adds per tile, final tiny reduction in JAX.
    grp = acc.reshape(th * W // g, g, Cp)
    s_ref[0] = jnp.sum(grp, axis=0)
    q_ref[0] = jnp.sum(grp * grp, axis=0)


def _bn_relu_kernel(y_ref, scale_ref, shift_ref, o_ref):
    """Pass 2: out = relu(y * scale + shift); bf16 in/out, f32 math."""
    y = y_ref[...].astype(jnp.float32)
    o_ref[...] = jnp.maximum(y * scale_ref[...] + shift_ref[...], 0.0).astype(o_ref.dtype)


def conv3x3_bn_relu(x_nhwc, w_oihw, gamma, beta):
    """Conv3x3(pad=1, no bias) -> BatchNorm2d(training batch stats) -> ReLU.

    x_nhwc: (N, H, W, Cx) — channels beyond w_oihw.shape[1] must be zero (carries
    the previous layer's lane padding).  Returns ((N, H, W, Cp) bf16, Cout) with
    channels >= Cout exactly zero.
    """
    N, H, W, Cx = x_nhwc.shape
    Cout, Cin_w = w_oihw.shape[0], w_oihw.shape[1]
    assert Cin_w <= Cx
    Cp = _round_up(Cout, _LANE)
    limit, budget = _vmem_limits()

    x = x_nhwc.astype(jnp.bfloat16)
    Cxp = _round_up(Cx, 8)                  # keep the contraction dim sublane-friendly

    # Weights: (Cout, Cin, 3, 3) -> (3, 3, Cxp, Cp); zero pads contribute exact zeros.
    w_t = jnp.transpose(w_oihw, (2, 3, 1, 0)).astype(jnp.bfloat16)   # (3,3,Cin_w,Cout)
    w_p = jnp.zeros((3, 3, Cxp, Cp), jnp.bfloat16).at[:, :, :Cin_w, :Cout].set(w_t)

    # Halo'd row bands (only JAX-side prep; ~(th+2)/th HBM inflation, no 9x im2col).
    th = _pick_band_rows(H, W, Cxp, Cp, budget)
    nb = H // th
    NB = N * nb
    xp = jnp.pad(x, ((0, 0), (1, 1), (1, 1), (0, Cxp - Cx)))
    bands = jnp.stack([xp[:, b * th:b * th + th + 2] for b in range(nb)], axis=1)
    bands = bands.reshape(NB, th + 2, W + 2, Cxp)

    g = 8 if (th * W) % 8 == 0 else 1
    kern = functools.partial(_conv_stats_kernel, th=th, W=W, Cin=Cxp, Cp=Cp, g=g)

    y, psum, psq = pl.pallas_call(
        kern,
        out_shape=(
            jax.ShapeDtypeStruct((NB, th * W, Cp), jnp.bfloat16),
            jax.ShapeDtypeStruct((NB, g, Cp), jnp.float32),
            jax.ShapeDtypeStruct((NB, g, Cp), jnp.float32),
        ),
        grid=(NB,),
        in_specs=[
            pl.BlockSpec((1, th + 2, W + 2, Cxp), lambda i: (i, 0, 0, 0)),
            pl.BlockSpec((3, 3, Cxp, Cp), lambda i: (0, 0, 0, 0)),
        ],
        out_specs=(
            pl.BlockSpec((1, th * W, Cp), lambda i: (i, 0, 0)),
            pl.BlockSpec((1, g, Cp), lambda i: (i, 0, 0)),
            pl.BlockSpec((1, g, Cp), lambda i: (i, 0, 0)),
        ),
        compiler_params=pltpu.CompilerParams(
            dimension_semantics=("parallel",),   # per-band partials -> no cross-step deps
            vmem_limit_bytes=limit),
    )(bands, w_p)

    # Global training-mode BN stats (biased variance) folded into scale/shift (tiny, f32).
    # TODO(synk): E[y^2]-mean^2 can cancel for huge M; switch to mean-shifted partials
    #             if this path is reused for training-grade statistics.
    M = N * H * W
    s1 = jnp.sum(psum, axis=(0, 1))
    s2 = jnp.sum(psq, axis=(0, 1))
    mean = s1 / M
    var = jnp.maximum(s2 / M - mean * mean, 0.0)
    gamma_p = jnp.zeros((Cp,), jnp.float32).at[:Cout].set(gamma.astype(jnp.float32))
    beta_p = jnp.zeros((Cp,), jnp.float32).at[:Cout].set(beta.astype(jnp.float32))
    scale_v = gamma_p * jax.lax.rsqrt(var + EPS)
    shift_v = beta_p - mean * scale_v
    scale = scale_v.reshape(1, Cp)
    shift = shift_v.reshape(1, Cp)

    # Pass 2: normalize + ReLU, HBM-bound, large independent row tile, parallel grid.
    bm2 = _pick_bn_rows(M, Cp, budget)
    y2d = y.reshape(M, Cp)
    out = pl.pallas_call(
        _bn_relu_kernel,
        out_shape=jax.ShapeDtypeStruct((M, Cp), jnp.bfloat16),
        grid=(pl.cdiv(M, bm2),),
        in_specs=[
            pl.BlockSpec((bm2, Cp), lambda i: (i, 0)),
            pl.BlockSpec((1, Cp), lambda i: (0, 0)),
            pl.BlockSpec((1, Cp), lambda i: (0, 0)),
        ],
        out_specs=pl.BlockSpec((bm2, Cp), lambda i: (i, 0)),
        compiler_params=pltpu.CompilerParams(
            dimension_semantics=("parallel",),
            vmem_limit_bytes=limit),
    )(y2d, scale, shift)

    return out.reshape(N, H, W, Cp), Cout


def double_conv(x_nchw, params):
    """DoubleConv forward. x_nchw: (N, Cin, H, W) -> (N, Cout, H, W) f32."""
    w1, g1, b1, w2, g2, b2 = params
    # NCHW <-> NHWC kept at the module boundary; hoist outside the network if the
    # surrounding model can run NHWC end-to-end.
    x = jnp.transpose(x_nchw, (0, 2, 3, 1)).astype(jnp.bfloat16)
    y, _ = conv3x3_bn_relu(x, w1, g1, b1)       # padded channels carried (zero weights)
    y, c2 = conv3x3_bn_relu(y, w2, g2, b2)
    y = y[..., :c2]
    return jnp.transpose(y, (0, 3, 1, 2)).astype(jnp.float32)


# ---------------- pure-JAX reference (for correctness check) ----------------
def _ref_block(x, w, g, b):  # NCHW; bf16 conv inputs + f32 accumulation, like the kernel
    y = jax.lax.conv_general_dilated(
        x.astype(jnp.bfloat16), w.astype(jnp.bfloat16),
        window_strides=(1, 1), padding=((1, 1), (1, 1)),
        dimension_numbers=('NCHW', 'OIHW', 'NCHW'),
        preferred_element_type=jnp.float32)
    mean = jnp.mean(y, axis=(0, 2, 3), keepdims=True)
    var = jnp.mean((y - mean) ** 2, axis=(0, 2, 3), keepdims=True)
    yn = (y - mean) * jax.lax.rsqrt(var + EPS)
    yn = yn * g.reshape(1, -1, 1, 1) + b.reshape(1, -1, 1, 1)
    return jnp.maximum(yn, 0.0)


def ref_double_conv(x, params):
    w1, g1, b1, w2, g2, b2 = params
    return _ref_block(_ref_block(x, w1, g1, b1), w2, g2, b2)


if __name__ == "__main__":
    key = jax.random.PRNGKey(0)
    kx, kw1, kw2, kg1, kb1, kg2, kb2 = jax.random.split(key, 7)

    # Small shapes; th is capped at H//2 so the banding path (nb=2, NB=4) is exercised.
    N, Cin, H, W = 2, 4, 16, 16
    mid_c, out_c = 8, 8  # mid_channels defaults to out_channels

    x = jax.random.normal(kx, (N, Cin, H, W), dtype=jnp.float32)

    # deterministic synthetic parameters (no checkpoint loading)
    w1 = 0.1 * jax.random.normal(kw1, (mid_c, Cin, 3, 3), dtype=jnp.float32)
    w2 = 0.1 * jax.random.normal(kw2, (out_c, mid_c, 3, 3), dtype=jnp.float32)
    g1 = 1.0 + 0.1 * jax.random.normal(kg1, (mid_c,), dtype=jnp.float32)
    b1 = 0.1 * jax.random.normal(kb1, (mid_c,), dtype=jnp.float32)
    g2 = 1.0 + 0.1 * jax.random.normal(kg2, (out_c,), dtype=jnp.float32)
    b2 = 0.1 * jax.random.normal(kb2, (out_c,), dtype=jnp.float32)
    params = (w1, g1, b1, w2, g2, b2)

    out = jax.block_until_ready(jax.jit(double_conv)(x, params))
    ref = jax.block_until_ready(ref_double_conv(x, params))

    assert out.shape == (N, out_c, H, W), out.shape
    err = float(jnp.max(jnp.abs(out - ref)))
    # Tolerance reflects bf16 storage of intermediates (stats/accumulation stay f32).
    assert jnp.allclose(out, ref, atol=4e-2, rtol=4e-2), err

    print("KERNEL_OK")
</pallas_src>

<mosaic_0001>
module attributes {stable_mosaic.version = 11 : i64} {
  func.func @_conv_stats_kernel(%arg0: i32, %arg1: memref<1x10x18x8xbf16, #tpu.memory_space<vmem>>, %arg2: memref<3x3x8x128xbf16, #tpu.memory_space<vmem>>, %arg3: memref<1x128x128xbf16, #tpu.memory_space<vmem>>, %arg4: memref<1x8x128xf32, #tpu.memory_space<vmem>>, %arg5: memref<1x8x128xf32, #tpu.memory_space<vmem>>) attributes {dimension_semantics = [#tpu.dimension_semantics<parallel>], iteration_bounds = array<i64: 4>, scalar_prefetch = 0 : i64, scratch_operands = 0 : i64, tpu.core_type = #tpu.core_type<tc>, window_params = [{transform_indices = @transform_0, window_bounds = array<i64: 1, 10, 18, 8>}, {pipeline_mode = #tpu.pipeline_mode<synchronous>, transform_indices = @transform_1, window_bounds = array<i64: 3, 3, 8, 128>}, {transform_indices = @transform_2, window_bounds = array<i64: 1, 128, 128>}, {transform_indices = @transform_3, window_bounds = array<i64: 1, 8, 128>}, {transform_indices = @transform_4, window_bounds = array<i64: 1, 8, 128>}]} {
    %c0 = arith.constant 0 : index
    %c0_0 = arith.constant 0 : index
    %c0_1 = arith.constant 0 : index
    %c0_2 = arith.constant 0 : index
    %0 = vector.load %arg1[%c0, %c0_0, %c0_1, %c0_2] : memref<1x10x18x8xbf16, #tpu.memory_space<vmem>>, vector<1x10x18x8xbf16>
    %1 = vector.shape_cast %0 : vector<1x10x18x8xbf16> to vector<10x18x8xbf16>
    %c0_3 = arith.constant 0 : index
    %c0_4 = arith.constant 0 : index
    %c0_5 = arith.constant 0 : index
    %c0_6 = arith.constant 0 : index
    %2 = vector.load %arg2[%c0_3, %c0_4, %c0_5, %c0_6] : memref<3x3x8x128xbf16, #tpu.memory_space<vmem>>, vector<3x3x8x128xbf16>
    %cst = arith.constant 0.000000e+00 : f32
    %3 = vector.broadcast %cst : f32 to vector<128x128xf32>
    %4 = vector.extract_strided_slice %1 {offsets = [0, 0, 0], sizes = [8, 16, 8], strides = [1, 1, 1]} : vector<10x18x8xbf16> to vector<8x16x8xbf16>
    %5 = vector.shape_cast %4 : vector<8x16x8xbf16> to vector<128x8xbf16>
    %6 = vector.extract_strided_slice %2 {offsets = [0, 0, 0, 0], sizes = [1, 1, 8, 128], strides = [1, 1, 1, 1]} : vector<3x3x8x128xbf16> to vector<1x1x8x128xbf16>
    %7 = vector.shape_cast %6 : vector<1x1x8x128xbf16> to vector<8x128xbf16>
    %cst_7 = arith.constant dense<0.000000e+00> : vector<128x128xf32>
    %8 = tpu.matmul %5, %7, %cst_7 {dimension_numbers = #tpu.dot_dimension_numbers<[1], [0], [0], [1], [0, 0, 1, 1], [], []>} : vector<128x8xbf16>, vector<8x128xbf16>, vector<128x128xf32> -> vector<128x128xf32>
    %9 = arith.addf %3, %8 : vector<128x128xf32>
    %10 = vector.extract_strided_slice %1 {offsets = [0, 1, 0], sizes = [8, 16, 8], strides = [1, 1, 1]} : vector<10x18x8xbf16> to vector<8x16x8xbf16>
    %11 = vector.shape_cast %10 : vector<8x16x8xbf16> to vector<128x8xbf16>
    %12 = vector.extract_strided_slice %2 {offsets = [0, 1, 0, 0], sizes = [1, 1, 8, 128], strides = [1, 1, 1, 1]} : vector<3x3x8x128xbf16> to vector<1x1x8x128xbf16>
    %13 = vector.shape_cast %12 : vector<1x1x8x128xbf16> to vector<8x128xbf16>
    %cst_8 = arith.constant dense<0.000000e+00> : vector<128x128xf32>
    %14 = tpu.matmul %11, %13, %cst_8 {dimension_numbers = #tpu.dot_dimension_numbers<[1], [0], [0], [1], [0, 0, 1, 1], [], []>} : vector<128x8xbf16>, vector<8x128xbf16>, vector<128x128xf32> -> vector<128x128xf32>
    %15 = arith.addf %9, %14 : vector<128x128xf32>
    %16 = vector.extract_strided_slice %1 {offsets = [0, 2, 0], sizes = [8, 16, 8], strides = [1, 1, 1]} : vector<10x18x8xbf16> to vector<8x16x8xbf16>
    %17 = vector.shape_cast %16 : vector<8x16x8xbf16> to vector<128x8xbf16>
    %18 = vector.extract_strided_slice %2 {offsets = [0, 2, 0, 0], sizes = [1, 1, 8, 128], strides = [1, 1, 1, 1]} : vector<3x3x8x128xbf16> to vector<1x1x8x128xbf16>
    %19 = vector.shape_cast %18 : vector<1x1x8x128xbf16> to vector<8x128xbf16>
    %cst_9 = arith.constant dense<0.000000e+00> : vector<128x128xf32>
    %20 = tpu.matmul %17, %19, %cst_9 {dimension_numbers = #tpu.dot_dimension_numbers<[1], [0], [0], [1], [0, 0, 1, 1], [], []>} : vector<128x8xbf16>, vector<8x128xbf16>, vector<128x128xf32> -> vector<128x128xf32>
    %21 = arith.addf %15, %20 : vector<128x128xf32>
    %22 = vector.extract_strided_slice %1 {offsets = [1, 0, 0], sizes = [8, 16, 8], strides = [1, 1, 1]} : vector<10x18x8xbf16> to vector<8x16x8xbf16>
    %23 = vector.shape_cast %22 : vector<8x16x8xbf16> to vector<128x8xbf16>
    %24 = vector.extract_strided_slice %2 {offsets = [1, 0, 0, 0], sizes = [1, 1, 8, 128], strides = [1, 1, 1, 1]} : vector<3x3x8x128xbf16> to vector<1x1x8x128xbf16>
    %25 = vector.shape_cast %24 : vector<1x1x8x128xbf16> to vector<8x128xbf16>
    %cst_10 = arith.constant dense<0.000000e+00> : vector<128x128xf32>
    %26 = tpu.matmul %23, %25, %cst_10 {dimension_numbers = #tpu.dot_dimension_numbers<[1], [0], [0], [1], [0, 0, 1, 1], [], []>} : vector<128x8xbf16>, vector<8x128xbf16>, vector<128x128xf32> -> vector<128x128xf32>
    %27 = arith.addf %21, %26 : vector<128x128xf32>
    %28 = vector.extract_strided_slice %1 {offsets = [1, 1, 0], sizes = [8, 16, 8], strides = [1, 1, 1]} : vector<10x18x8xbf16> to vector<8x16x8xbf16>
    %29 = vector.shape_cast %28 : vector<8x16x8xbf16> to vector<128x8xbf16>
    %30 = vector.extract_strided_slice %2 {offsets = [1, 1, 0, 0], sizes = [1, 1, 8, 128], strides = [1, 1, 1, 1]} : vector<3x3x8x128xbf16> to vector<1x1x8x128xbf16>
    %31 = vector.shape_cast %30 : vector<1x1x8x128xbf16> to vector<8x128xbf16>
    %cst_11 = arith.constant dense<0.000000e+00> : vector<128x128xf32>
    %32 = tpu.matmul %29, %31, %cst_11 {dimension_numbers = #tpu.dot_dimension_numbers<[1], [0], [0], [1], [0, 0, 1, 1], [], []>} : vector<128x8xbf16>, vector<8x128xbf16>, vector<128x128xf32> -> vector<128x128xf32>
    %33 = arith.addf %27, %32 : vector<128x128xf32>
    %34 = vector.extract_strided_slice %1 {offsets = [1, 2, 0], sizes = [8, 16, 8], strides = [1, 1, 1]} : vector<10x18x8xbf16> to vector<8x16x8xbf16>
    %35 = vector.shape_cast %34 : vector<8x16x8xbf16> to vector<128x8xbf16>
    %36 = vector.extract_strided_slice %2 {offsets = [1, 2, 0, 0], sizes = [1, 1, 8, 128], strides = [1, 1, 1, 1]} : vector<3x3x8x128xbf16> to vector<1x1x8x128xbf16>
    %37 = vector.shape_cast %36 : vector<1x1x8x128xbf16> to vector<8x128xbf16>
    %cst_12 = arith.constant dense<0.000000e+00> : vector<128x128xf32>
    %38 = tpu.matmul %35, %37, %cst_12 {dimension_numbers = #tpu.dot_dimension_numbers<[1], [0], [0], [1], [0, 0, 1, 1], [], []>} : vector<128x8xbf16>, vector<8x128xbf16>, vector<128x128xf32> -> vector<128x128xf32>
    %39 = arith.addf %33, %38 : vector<128x128xf32>
    %40 = vector.extract_strided_slice %1 {offsets = [2, 0, 0], sizes = [8, 16, 8], strides = [1, 1, 1]} : vector<10x18x8xbf16> to vector<8x16x8xbf16>
    %41 = vector.shape_cast %40 : vector<8x16x8xbf16> to vector<128x8xbf16>
    %42 = vector.extract_strided_slice %2 {offsets = [2, 0, 0, 0], sizes = [1, 1, 8, 128], strides = [1, 1, 1, 1]} : vector<3x3x8x128xbf16> to vector<1x1x8x128xbf16>
    %43 = vector.shape_cast %42 : vector<1x1x8x128xbf16> to vector<8x128xbf16>
    %cst_13 = arith.constant dense<0.000000e+00> : vector<128x128xf32>
    %44 = tpu.matmul %41, %43, %cst_13 {dimension_numbers = #tpu.dot_dimension_numbers<[1], [0], [0], [1], [0, 0, 1, 1], [], []>} : vector<128x8xbf16>, vector<8x128xbf16>, vector<128x128xf32> -> vector<128x128xf32>
    %45 = arith.addf %39, %44 : vector<128x128xf32>
    %46 = vector.extract_strided_slice %1 {offsets = [2, 1, 0], sizes = [8, 16, 8], strides = [1, 1, 1]} : vector<10x18x8xbf16> to vector<8x16x8xbf16>
    %47 = vector.shape_cast %46 : vector<8x16x8xbf16> to vector<128x8xbf16>
    %48 = vector.extract_strided_slice %2 {offsets = [2, 1, 0, 0], sizes = [1, 1, 8, 128], strides = [1, 1, 1, 1]} : vector<3x3x8x128xbf16> to vector<1x1x8x128xbf16>
    %49 = vector.shape_cast %48 : vector<1x1x8x128xbf16> to vector<8x128xbf16>
    %cst_14 = arith.constant dense<0.000000e+00> : vector<128x128xf32>
    %50 = tpu.matmul %47, %49, %cst_14 {dimension_numbers = #tpu.dot_dimension_numbers<[1], [0], [0], [1], [0, 0, 1, 1], [], []>} : vector<128x8xbf16>, vector<8x128xbf16>, vector<128x128xf32> -> vector<128x128xf32>
    %51 = arith.addf %45, %50 : vector<128x128xf32>
    %52 = vector.extract_strided_slice %1 {offsets = [2, 2, 0], sizes = [8, 16, 8], strides = [1, 1, 1]} : vector<10x18x8xbf16> to vector<8x16x8xbf16>
    %53 = vector.shape_cast %52 : vector<8x16x8xbf16> to vector<128x8xbf16>
    %54 = vector.extract_strided_slice %2 {offsets = [2, 2, 0, 0], sizes = [1, 1, 8, 128], strides = [1, 1, 1, 1]} : vector<3x3x8x128xbf16> to vector<1x1x8x128xbf16>
    %55 = vector.shape_cast %54 : vector<1x1x8x128xbf16> to vector<8x128xbf16>
    %cst_15 = arith.constant dense<0.000000e+00> : vector<128x128xf32>
    %56 = tpu.matmul %53, %55, %cst_15 {dimension_numbers = #tpu.dot_dimension_numbers<[1], [0], [0], [1], [0, 0, 1, 1], [], []>} : vector<128x8xbf16>, vector<8x128xbf16>, vector<128x128xf32> -> vector<128x128xf32>
    %57 = arith.addf %51, %56 : vector<128x128xf32>
    %58 = arith.truncf %57 : vector<128x128xf32> to vector<128x128xbf16>
    %c0_16 = arith.constant 0 : index
    %c0_17 = arith.constant 0 : index
    %c0_18 = arith.constant 0 : index
    %59 = vector.load %arg3[%c0_16, %c0_17, %c0_18] : memref<1x128x128xbf16, #tpu.memory_space<vmem>>, vector<1x128x128xbf16>
    %60 = vector.shape_cast %59 : vector<1x128x128xbf16> to vector<128x128xbf16>
    %61 = vector.shape_cast %58 : vector<128x128xbf16> to vector<1x128x128xbf16>
    tpu.vector_store %arg3[%c0_16, %c0_17, %c0_18], %61 {strides = array<i32>} : memref<1x128x128xbf16, #tpu.memory_space<vmem>>, vector<1x128x128xbf16>,
    %62 = vector.shape_cast %57 : vector<128x128xf32> to vector<16x8x128xf32>
    %cst_19 = arith.constant dense<0.000000e+00> : vector<8x128xf32>
    %63 = vector.multi_reduction <add>, %62, %cst_19 [0] : vector<16x8x128xf32> to vector<8x128xf32>
    %c0_20 = arith.constant 0 : index
    %c0_21 = arith.constant 0 : index
    %c0_22 = arith.constant 0 : index
    %64 = vector.load %arg4[%c0_20, %c0_21, %c0_22] : memref<1x8x128xf32, #tpu.memory_space<vmem>>, vector<1x8x128xf32>
    %65 = vector.shape_cast %64 : vector<1x8x128xf32> to vector<8x128xf32>
    %66 = vector.shape_cast %63 : vector<8x128xf32> to vector<1x8x128xf32>
    tpu.vector_store %arg4[%c0_20, %c0_21, %c0_22], %66 {strides = array<i32>} : memref<1x8x128xf32, #tpu.memory_space<vmem>>, vector<1x8x128xf32>,
    %67 = arith.mulf %62, %62 : vector<16x8x128xf32>
    %cst_23 = arith.constant dense<0.000000e+00> : vector<8x128xf32>
    %68 = vector.multi_reduction <add>, %67, %cst_23 [0] : vector<16x8x128xf32> to vector<8x128xf32>
    %c0_24 = arith.constant 0 : index
    %c0_25 = arith.constant 0 : index
    %c0_26 = arith.constant 0 : index
    %69 = vector.load %arg5[%c0_24, %c0_25, %c0_26] : memref<1x8x128xf32, #tpu.memory_space<vmem>>, vector<1x8x128xf32>
    %70 = vector.shape_cast %69 : vector<1x8x128xf32> to vector<8x128xf32>
    %71 = vector.shape_cast %68 : vector<8x128xf32> to vector<1x8x128xf32>
    tpu.vector_store %arg5[%c0_24, %c0_25, %c0_26], %71 {strides = array<i32>} : memref<1x8x128xf32, #tpu.memory_space<vmem>>, vector<1x8x128xf32>,
    return
  }
  func.func @transform_0(%arg0: i32) -> (i32, i32, i32, i32) {
    %c0_i32 = arith.constant 0 : i32
    %c0_i32_0 = arith.constant 0 : i32
    %c0_i32_1 = arith.constant 0 : i32
    %c0_i32_2 = arith.constant 0 : i32
    return %arg0, %c0_i32, %c0_i32_0, %c0_i32_1 : i32, i32, i32, i32
  }
  func.func @transform_1(%arg0: i32) -> (i32, i32, i32, i32) {
    %c0_i32 = arith.constant 0 : i32
    %c0_i32_0 = arith.constant 0 : i32
    %c0_i32_1 = arith.constant 0 : i32
    %c0_i32_2 = arith.constant 0 : i32
    %c0_i32_3 = arith.constant 0 : i32
    return %c0_i32, %c0_i32_0, %c0_i32_1, %c0_i32_2 : i32, i32, i32, i32
  }
  func.func @transform_2(%arg0: i32) -> (i32, i32, i32) {
    %c0_i32 = arith.constant 0 : i32
    %c0_i32_0 = arith.constant 0 : i32
    %c0_i32_1 = arith.constant 0 : i32
    return %arg0, %c0_i32, %c0_i32_0 : i32, i32, i32
  }
  func.func @transform_3(%arg0: i32) -> (i32, i32, i32) {
    %c0_i32 = arith.constant 0 : i32
    %c0_i32_0 = arith.constant 0 : i32
    %c0_i32_1 = arith.constant 0 : i32
    return %arg0, %c0_i32, %c0_i32_0 : i32, i32, i32
  }
  func.func @transform_4(%arg0: i32) -> (i32, i32, i32) {
    %c0_i32 = arith.constant 0 : i32
    %c0_i32_0 = arith.constant 0 : i32
    %c0_i32_1 = arith.constant 0 : i32
    return %arg0, %c0_i32, %c0_i32_0 : i32, i32, i32
  }
}

module attributes {stable_mosaic.version = 11 : i64} {
  func.func @_bn_relu_kernel(%arg0: i32, %arg1: memref<512x128xbf16, #tpu.memory_space<vmem>>, %arg2: memref<1x128xf32, #tpu.memory_space<vmem>>, %arg3: memref<1x128xf32, #tpu.memory_space<vmem>>, %arg4: memref<512x128xbf16, #tpu.memory_space<vmem>>) attributes {dimension_semantics = [#tpu.dimension_semantics<parallel>], iteration_bounds = array<i64: 1>, scalar_prefetch = 0 : i64, scratch_operands = 0 : i64, tpu.core_type = #tpu.core_type<tc>, window_params = [{transform_indices = @transform_0, window_bounds = array<i64: 512, 128>}, {pipeline_mode = #tpu.pipeline_mode<synchronous>, transform_indices = @transform_1, window_bounds = array<i64: 1, 128>}, {pipeline_mode = #tpu.pipeline_mode<synchronous>, transform_indices = @transform_2, window_bounds = array<i64: 1, 128>}, {transform_indices = @transform_3, window_bounds = array<i64: 512, 128>}]} {
    %c0 = arith.constant 0 : index
    %c0_0 = arith.constant 0 : index
    %0 = vector.load %arg1[%c0, %c0_0] : memref<512x128xbf16, #tpu.memory_space<vmem>>, vector<512x128xbf16>
    %1 = arith.extf %0 : vector<512x128xbf16> to vector<512x128xf32>
    %c0_1 = arith.constant 0 : index
    %c0_2 = arith.constant 0 : index
    %2 = vector.load %arg2[%c0_1, %c0_2] : memref<1x128xf32, #tpu.memory_space<vmem>>, vector<1x128xf32>
    %3 = vector.broadcast %2 : vector<1x128xf32> to vector<512x128xf32>
    %4 = arith.mulf %1, %3 : vector<512x128xf32>
    %c0_3 = arith.constant 0 : index
    %c0_4 = arith.constant 0 : index
    %5 = vector.load %arg3[%c0_3, %c0_4] : memref<1x128xf32, #tpu.memory_space<vmem>>, vector<1x128xf32>
    %6 = vector.broadcast %5 : vector<1x128xf32> to vector<512x128xf32>
    %7 = arith.addf %4, %6 : vector<512x128xf32>
    %cst = arith.constant 0.000000e+00 : f32
    %8 = vector.broadcast %cst : f32 to vector<512x128xf32>
    %9 = arith.maximumf %7, %8 : vector<512x128xf32>
    %10 = arith.truncf %9 : vector<512x128xf32> to vector<512x128xbf16>
    %c0_5 = arith.constant 0 : index
    %c0_6 = arith.constant 0 : index
    %11 = vector.load %arg4[%c0_5, %c0_6] : memref<512x128xbf16, #tpu.memory_space<vmem>>, vector<512x128xbf16>
    tpu.vector_store %arg4[%c0_5, %c0_6], %10 {strides = array<i32>} : memref<512x128xbf16, #tpu.memory_space<vmem>>, vector<512x128xbf16>,
    return
  }
  func.func @transform_0(%arg0: i32) -> (i32, i32) {
    %c0_i32 = arith.constant 0 : i32
    %c0_i32_0 = arith.constant 0 : i32
    return %arg0, %c0_i32 : i32, i32
  }
  func.func @transform_1(%arg0: i32) -> (i32, i32) {
    %c0_i32 = arith.constant 0 : i32
    %c0_i32_0 = arith.constant 0 : i32
    %c0_i32_1 = arith.constant 0 : i32
    return %c0_i32, %c0_i32_0 : i32, i32
  }
  func.func @transform_2(%arg0: i32) -> (i32, i32) {
    %c0_i32 = arith.constant 0 : i32
    %c0_i32_0 = arith.constant 0 : i32
    %c0_i32_1 = arith.constant 0 : i32
    return %c0_i32, %c0_i32_0 : i32, i32
  }
  func.func @transform_3(%arg0: i32) -> (i32, i32) {
    %c0_i32 = arith.constant 0 : i32
    %c0_i32_0 = arith.constant 0 : i32
    return %arg0, %c0_i32 : i32, i32
  }
}

module attributes {stable_mosaic.version = 11 : i64} {
  func.func @_conv_stats_kernel(%arg0: i32, %arg1: memref<1x10x18x128xbf16, #tpu.memory_space<vmem>>, %arg2: memref<3x3x128x128xbf16, #tpu.memory_space<vmem>>, %arg3: memref<1x128x128xbf16, #tpu.memory_space<vmem>>, %arg4: memref<1x8x128xf32, #tpu.memory_space<vmem>>, %arg5: memref<1x8x128xf32, #tpu.memory_space<vmem>>) attributes {dimension_semantics = [#tpu.dimension_semantics<parallel>], iteration_bounds = array<i64: 4>, scalar_prefetch = 0 : i64, scratch_operands = 0 : i64, tpu.core_type = #tpu.core_type<tc>, window_params = [{transform_indices = @transform_0, window_bounds = array<i64: 1, 10, 18, 128>}, {pipeline_mode = #tpu.pipeline_mode<synchronous>, transform_indices = @transform_1, window_bounds = array<i64: 3, 3, 128, 128>}, {transform_indices = @transform_2, window_bounds = array<i64: 1, 128, 128>}, {transform_indices = @transform_3, window_bounds = array<i64: 1, 8, 128>}, {transform_indices = @transform_4, window_bounds = array<i64: 1, 8, 128>}]} {
    %c0 = arith.constant 0 : index
    %c0_0 = arith.constant 0 : index
    %c0_1 = arith.constant 0 : index
    %c0_2 = arith.constant 0 : index
    %0 = vector.load %arg1[%c0, %c0_0, %c0_1, %c0_2] : memref<1x10x18x128xbf16, #tpu.memory_space<vmem>>, vector<1x10x18x128xbf16>
    %1 = vector.shape_cast %0 : vector<1x10x18x128xbf16> to vector<10x18x128xbf16>
    %c0_3 = arith.constant 0 : index
    %c0_4 = arith.constant 0 : index
    %c0_5 = arith.constant 0 : index
    %c0_6 = arith.constant 0 : index
    %2 = vector.load %arg2[%c0_3, %c0_4, %c0_5, %c0_6] : memref<3x3x128x128xbf16, #tpu.memory_space<vmem>>, vector<3x3x128x128xbf16>
    %cst = arith.constant 0.000000e+00 : f32
    %3 = vector.broadcast %cst : f32 to vector<128x128xf32>
    %4 = vector.extract_strided_slice %1 {offsets = [0, 0, 0], sizes = [8, 16, 128], strides = [1, 1, 1]} : vector<10x18x128xbf16> to vector<8x16x128xbf16>
    %5 = vector.shape_cast %4 : vector<8x16x128xbf16> to vector<128x128xbf16>
    %6 = vector.extract_strided_slice %2 {offsets = [0, 0, 0, 0], sizes = [1, 1, 128, 128], strides = [1, 1, 1, 1]} : vector<3x3x128x128xbf16> to vector<1x1x128x128xbf16>
    %7 = vector.shape_cast %6 : vector<1x1x128x128xbf16> to vector<128x128xbf16>
    %cst_7 = arith.constant dense<0.000000e+00> : vector<128x128xf32>
    %8 = tpu.matmul %5, %7, %cst_7 {dimension_numbers = #tpu.dot_dimension_numbers<[1], [0], [0], [1], [0, 0, 1, 1], [], []>} : vector<128x128xbf16>, vector<128x128xbf16>, vector<128x128xf32> -> vector<128x128xf32>
    %9 = arith.addf %3, %8 : vector<128x128xf32>
    %10 = vector.extract_strided_slice %1 {offsets = [0, 1, 0], sizes = [8, 16, 128], strides = [1, 1, 1]} : vector<10x18x128xbf16> to vector<8x16x128xbf16>
    %11 = vector.shape_cast %10 : vector<8x16x128xbf16> to vector<128x128xbf16>
    %12 = vector.extract_strided_slice %2 {offsets = [0, 1, 0, 0], sizes = [1, 1, 128, 128], strides = [1, 1, 1, 1]} : vector<3x3x128x128xbf16> to vector<1x1x128x128xbf16>
    %13 = vector.shape_cast %12 : vector<1x1x128x128xbf16> to vector<128x128xbf16>
    %cst_8 = arith.constant dense<0.000000e+00> : vector<128x128xf32>
    %14 = tpu.matmul %11, %13, %cst_8 {dimension_numbers = #tpu.dot_dimension_numbers<[1], [0], [0], [1], [0, 0, 1, 1], [], []>} : vector<128x128xbf16>, vector<128x128xbf16>, vector<128x128xf32> -> vector<128x128xf32>
    %15 = arith.addf %9, %14 : vector<128x128xf32>
    %16 = vector.extract_strided_slice %1 {offsets = [0, 2, 0], sizes = [8, 16, 128], strides = [1, 1, 1]} : vector<10x18x128xbf16> to vector<8x16x128xbf16>
    %17 = vector.shape_cast %16 : vector<8x16x128xbf16> to vector<128x128xbf16>
    %18 = vector.extract_strided_slice %2 {offsets = [0, 2, 0, 0], sizes = [1, 1, 128, 128], strides = [1, 1, 1, 1]} : vector<3x3x128x128xbf16> to vector<1x1x128x128xbf16>
    %19 = vector.shape_cast %18 : vector<1x1x128x128xbf16> to vector<128x128xbf16>
    %cst_9 = arith.constant dense<0.000000e+00> : vector<128x128xf32>
    %20 = tpu.matmul %17, %19, %cst_9 {dimension_numbers = #tpu.dot_dimension_numbers<[1], [0], [0], [1], [0, 0, 1, 1], [], []>} : vector<128x128xbf16>, vector<128x128xbf16>, vector<128x128xf32> -> vector<128x128xf32>
    %21 = arith.addf %15, %20 : vector<128x128xf32>
    %22 = vector.extract_strided_slice %1 {offsets = [1, 0, 0], sizes = [8, 16, 128], strides = [1, 1, 1]} : vector<10x18x128xbf16> to vector<8x16x128xbf16>
    %23 = vector.shape_cast %22 : vector<8x16x128xbf16> to vector<128x128xbf16>
    %24 = vector.extract_strided_slice %2 {offsets = [1, 0, 0, 0], sizes = [1, 1, 128, 128], strides = [1, 1, 1, 1]} : vector<3x3x128x128xbf16> to vector<1x1x128x128xbf16>
    %25 = vector.shape_cast %24 : vector<1x1x128x128xbf16> to vector<128x128xbf16>
    %cst_10 = arith.constant dense<0.000000e+00> : vector<128x128xf32>
    %26 = tpu.matmul %23, %25, %cst_10 {dimension_numbers = #tpu.dot_dimension_numbers<[1], [0], [0], [1], [0, 0, 1, 1], [], []>} : vector<128x128xbf16>, vector<128x128xbf16>, vector<128x128xf32> -> vector<128x128xf32>
    %27 = arith.addf %21, %26 : vector<128x128xf32>
    %28 = vector.extract_strided_slice %1 {offsets = [1, 1, 0], sizes = [8, 16, 128], strides = [1, 1, 1]} : vector<10x18x128xbf16> to vector<8x16x128xbf16>
    %29 = vector.shape_cast %28 : vector<8x16x128xbf16> to vector<128x128xbf16>
    %30 = vector.extract_strided_slice %2 {offsets = [1, 1, 0, 0], sizes = [1, 1, 128, 128], strides = [1, 1, 1, 1]} : vector<3x3x128x128xbf16> to vector<1x1x128x128xbf16>
    %31 = vector.shape_cast %30 : vector<1x1x128x128xbf16> to vector<128x128xbf16>
    %cst_11 = arith.constant dense<0.000000e+00> : vector<128x128xf32>
    %32 = tpu.matmul %29, %31, %cst_11 {dimension_numbers = #tpu.dot_dimension_numbers<[1], [0], [0], [1], [0, 0, 1, 1], [], []>} : vector<128x128xbf16>, vector<128x128xbf16>, vector<128x128xf32> -> vector<128x128xf32>
    %33 = arith.addf %27, %32 : vector<128x128xf32>
    %34 = vector.extract_strided_slice %1 {offsets = [1, 2, 0], sizes = [8, 16, 128], strides = [1, 1, 1]} : vector<10x18x128xbf16> to vector<8x16x128xbf16>
    %35 = vector.shape_cast %34 : vector<8x16x128xbf16> to vector<128x128xbf16>
    %36 = vector.extract_strided_slice %2 {offsets = [1, 2, 0, 0], sizes = [1, 1, 128, 128], strides = [1, 1, 1, 1]} : vector<3x3x128x128xbf16> to vector<1x1x128x128xbf16>
    %37 = vector.shape_cast %36 : vector<1x1x128x128xbf16> to vector<128x128xbf16>
    %cst_12 = arith.constant dense<0.000000e+00> : vector<128x128xf32>
    %38 = tpu.matmul %35, %37, %cst_12 {dimension_numbers = #tpu.dot_dimension_numbers<[1], [0], [0], [1], [0, 0, 1, 1], [], []>} : vector<128x128xbf16>, vector<128x128xbf16>, vector<128x128xf32> -> vector<128x128xf32>
    %39 = arith.addf %33, %38 : vector<128x128xf32>
    %40 = vector.extract_strided_slice %1 {offsets = [2, 0, 0], sizes = [8, 16, 128], strides = [1, 1, 1]} : vector<10x18x128xbf16> to vector<8x16x128xbf16>
    %41 = vector.shape_cast %40 : vector<8x16x128xbf16> to vector<128x128xbf16>
    %42 = vector.extract_strided_slice %2 {offsets = [2, 0, 0, 0], sizes = [1, 1, 128, 128], strides = [1, 1, 1, 1]} : vector<3x3x128x128xbf16> to vector<1x1x128x128xbf16>
    %43 = vector.shape_cast %42 : vector<1x1x128x128xbf16> to vector<128x128xbf16>
    %cst_13 = arith.constant dense<0.000000e+00> : vector<128x128xf32>
    %44 = tpu.matmul %41, %43, %cst_13 {dimension_numbers = #tpu.dot_dimension_numbers<[1], [0], [0], [1], [0, 0, 1, 1], [], []>} : vector<128x128xbf16>, vector<128x128xbf16>, vector<128x128xf32> -> vector<128x128xf32>
    %45 = arith.addf %39, %44 : vector<128x128xf32>
    %46 = vector.extract_strided_slice %1 {offsets = [2, 1, 0], sizes = [8, 16, 128], strides = [1, 1, 1]} : vector<10x18x128xbf16> to vector<8x16x128xbf16>
    %47 = vector.shape_cast %46 : vector<8x16x128xbf16> to vector<128x128xbf16>
    %48 = vector.extract_strided_slice %2 {offsets = [2, 1, 0, 0], sizes = [1, 1, 128, 128], strides = [1, 1, 1, 1]} : vector<3x3x128x128xbf16> to vector<1x1x128x128xbf16>
    %49 = vector.shape_cast %48 : vector<1x1x128x128xbf16> to vector<128x128xbf16>
    %cst_14 = arith.constant dense<0.000000e+00> : vector<128x128xf32>
    %50 = tpu.matmul %47, %49, %cst_14 {dimension_numbers = #tpu.dot_dimension_numbers<[1], [0], [0], [1], [0, 0, 1, 1], [], []>} : vector<128x128xbf16>, vector<128x128xbf16>, vector<128x128xf32> -> vector<128x128xf32>
    %51 = arith.addf %45, %50 : vector<128x128xf32>
    %52 = vector.extract_strided_slice %1 {offsets = [2, 2, 0], sizes = [8, 16, 128], strides = [1, 1, 1]} : vector<10x18x128xbf16> to vector<8x16x128xbf16>
    %53 = vector.shape_cast %52 : vector<8x16x128xbf16> to vector<128x128xbf16>
    %54 = vector.extract_strided_slice %2 {offsets = [2, 2, 0, 0], sizes = [1, 1, 128, 128], strides = [1, 1, 1, 1]} : vector<3x3x128x128xbf16> to vector<1x1x128x128xbf16>
    %55 = vector.shape_cast %54 : vector<1x1x128x128xbf16> to vector<128x128xbf16>
    %cst_15 = arith.constant dense<0.000000e+00> : vector<128x128xf32>
    %56 = tpu.matmul %53, %55, %cst_15 {dimension_numbers = #tpu.dot_dimension_numbers<[1], [0], [0], [1], [0, 0, 1, 1], [], []>} : vector<128x128xbf16>, vector<128x128xbf16>, vector<128x128xf32> -> vector<128x128xf32>
    %57 = arith.addf %51, %56 : vector<128x128xf32>
    %58 = arith.truncf %57 : vector<128x128xf32> to vector<128x128xbf16>
    %c0_16 = arith.constant 0 : index
    %c0_17 = arith.constant 0 : index
    %c0_18 = arith.constant 0 : index
    %59 = vector.load %arg3[%c0_16, %c0_17, %c0_18] : memref<1x128x128xbf16, #tpu.memory_space<vmem>>, vector<1x128x128xbf16>
    %60 = vector.shape_cast %59 : vector<1x128x128xbf16> to vector<128x128xbf16>
    %61 = vector.shape_cast %58 : vector<128x128xbf16> to vector<1x128x128xbf16>
    tpu.vector_store %arg3[%c0_16, %c0_17, %c0_18], %61 {strides = array<i32>} : memref<1x128x128xbf16, #tpu.memory_space<vmem>>, vector<1x128x128xbf16>,
    %62 = vector.shape_cast %57 : vector<128x128xf32> to vector<16x8x128xf32>
    %cst_19 = arith.constant dense<0.000000e+00> : vector<8x128xf32>
    %63 = vector.multi_reduction <add>, %62, %cst_19 [0] : vector<16x8x128xf32> to vector<8x128xf32>
    %c0_20 = arith.constant 0 : index
    %c0_21 = arith.constant 0 : index
    %c0_22 = arith.constant 0 : index
    %64 = vector.load %arg4[%c0_20, %c0_21, %c0_22] : memref<1x8x128xf32, #tpu.memory_space<vmem>>, vector<1x8x128xf32>
    %65 = vector.shape_cast %64 : vector<1x8x128xf32> to vector<8x128xf32>
    %66 = vector.shape_cast %63 : vector<8x128xf32> to vector<1x8x128xf32>
    tpu.vector_store %arg4[%c0_20, %c0_21, %c0_22], %66 {strides = array<i32>} : memref<1x8x128xf32, #tpu.memory_space<vmem>>, vector<1x8x128xf32>,
    %67 = arith.mulf %62, %62 : vector<16x8x128xf32>
    %cst_23 = arith.constant dense<0.000000e+00> : vector<8x128xf32>
    %68 = vector.multi_reduction <add>, %67, %cst_23 [0] : vector<16x8x128xf32> to vector<8x128xf32>
    %c0_24 = arith.constant 0 : index
    %c0_25 = arith.constant 0 : index
    %c0_26 = arith.constant 0 : index
    %69 = vector.load %arg5[%c0_24, %c0_25, %c0_26] : memref<1x8x128xf32, #tpu.memory_space<vmem>>, vector<1x8x128xf32>
    %70 = vector.shape_cast %69 : vector<1x8x128xf32> to vector<8x128xf32>
    %71 = vector.shape_cast %68 : vector<8x128xf32> to vector<1x8x128xf32>
    tpu.vector_store %arg5[%c0_24, %c0_25, %c0_26], %71 {strides = array<i32>} : memref<1x8x128xf32, #tpu.memory_space<vmem>>, vector<1x8x128xf32>,
    return
  }
  func.func @transform_0(%arg0: i32) -> (i32, i32, i32, i32) {
    %c0_i32 = arith.constant 0 : i32
    %c0_i32_0 = arith.constant 0 : i32
    %c0_i32_1 = arith.constant 0 : i32
    %c0_i32_2 = arith.constant 0 : i32
    return %arg0, %c0_i32, %c0_i32_0, %c0_i32_1 : i32, i32, i32, i32
  }
  func.func @transform_1(%arg0: i32) -> (i32, i32, i32, i32) {
    %c0_i32 = arith.constant 0 : i32
    %c0_i32_0 = arith.constant 0 : i32
    %c0_i32_1 = arith.constant 0 : i32
    %c0_i32_2 = arith.constant 0 : i32
    %c0_i32_3 = arith.constant 0 : i32
    return %c0_i32, %c0_i32_0, %c0_i32_1, %c0_i32_2 : i32, i32, i32, i32
  }
  func.func @transform_2(%arg0: i32) -> (i32, i32, i32) {
    %c0_i32 = arith.constant 0 : i32
    %c0_i32_0 = arith.constant 0 : i32
    %c0_i32_1 = arith.constant 0 : i32
    return %arg0, %c0_i32, %c0_i32_0 : i32, i32, i32
  }
  func.func @transform_3(%arg0: i32) -> (i32, i32, i32) {
    %c0_i32 = arith.constant 0 : i32
    %c0_i32_0 = arith.constant 0 : i32
    %c0_i32_1 = arith.constant 0 : i32
    return %arg0, %c0_i32, %c0_i32_0 : i32, i32, i32
  }
  func.func @transform_4(%arg0: i32) -> (i32, i32, i32) {
    %c0_i32 = arith.constant 0 : i32
    %c0_i32_0 = arith.constant 0 : i32
    %c0_i32_1 = arith.constant 0 : i32
    return %arg0, %c0_i32, %c0_i32_0 : i32, i32, i32
  }
}

</mosaic_0001>

<bundles_post_ra>
// kernel: double_conv.5
= control target key start
LH: loop header
LB: loop body
LE: loop exit
PB: predicated region body
PF: predicated region fallthrough
CT: control target
= control target key end

     0   :  { %s1502_s0 = inlined_call_operand.vmem [shape: bf16[512,128], index: 0, kind: input, shape index: {}]   ;;  %s1503_s1 = inlined_call_operand.vmem [shape: f32[1,128], index: 1, kind: input, shape index: {}]   ;;  %s1504_s2 = inlined_call_operand.vmem [shape: f32[1,128], index: 2, kind: input, shape index: {}]   ;;  %s1505_s3 = inlined_call_operand.vmem [shape: bf16[512,128], index: 3, kind: output, shape index: {}]  }
   0x1   :  { %v803_v0 = vld [vmem:[%s1502_s0] sm:$0xff]   ;;  %v1090_v4 = vld [vmem:[%s1502_s0 + $0x8] sm:$0xff]   ;;  %v1091_v5 = vld [vmem:[%s1502_s0 + $0x10] sm:$0xff]  }
   0x2   :  { %v1178_v1 = vld [vmem:[%s1503_s1] ss:$0 sm:$0xff]  ;;  %v804_v2 = vunpack.c.l.bf16 %v803_v0  ;;  %v805_v3 = vunpack.c.h.bf16 %v803_v0  ;;  %v1092_v6 = vld [vmem:[%s1502_s0 + $0x18] sm:$0xff]   ;;  %v808_v8 = vunpack.c.l.bf16 %v1090_v4  ;;  %v809_v9 = vunpack.c.h.bf16 %v1090_v4  ;;  %v1094_v33 = vld [vmem:[%s1502_s0 + $0x28] sm:$0xff]  }
   0x3   :  { %v1192_v7 = vld [vmem:[%s1504_s2] ss:$0 sm:$0xff]  ;;  %v812_v10 = vunpack.c.l.bf16 %v1091_v5  ;;  %v813_v11 = vunpack.c.h.bf16 %v1091_v5  ;;  %v816_v14 = vunpack.c.l.bf16 %v1092_v6  ;;  %v817_v15 = vunpack.c.h.bf16 %v1092_v6  ;;  %v1095_v38 = vld [vmem:[%s1502_s0 + $0x30] sm:$0xff]   ;;  %v1096_v43 = vld [vmem:[%s1502_s0 + $0x38] sm:$0xff]  }
   0x4   :  { %v149_v12 = vmul.f32 %v804_v2, %v1178_v1  ;;  %v150_v13 = vmul.f32 %v805_v3, %v1178_v1  ;;  %v151_v16 = vmul.f32 %v808_v8, %v1178_v1  ;;  %v152_v17 = vmul.f32 %v809_v9, %v1178_v1  ;;  %v1093_v28 = vld [vmem:[%s1502_s0 + $0x20] sm:$0xff]  }
   0x5   :  { %v153_v18 = vmul.f32 %v812_v10, %v1178_v1  ;;  %v154_v19 = vmul.f32 %v813_v11, %v1178_v1  ;;  %v155_v22 = vmul.f32 %v816_v14, %v1178_v1  ;;  %v156_v23 = vmul.f32 %v817_v15, %v1178_v1  ;;  %v1097_v0 = vld [vmem:[%s1502_s0 + $0x40] sm:$0xff]   ;;  %v1098_v11 = vld [vmem:[%s1502_s0 + $0x48] sm:$0xff]  }
   0x6   :  { %v220_v20 = vadd.f32 %v1192_v7, %v149_v12  ;;  %v221_v21 = vadd.f32 %v1192_v7, %v150_v13  ;;  %v222_v24 = vadd.f32 %v1192_v7, %v151_v16  ;;  %v223_v25 = vadd.f32 %v1192_v7, %v152_v17  ;;  %v1099_v16 = vld [vmem:[%s1502_s0 + $0x50] sm:$0xff]  }
   0x7   :  { %v224_v26 = vadd.f32 %v1192_v7, %v153_v18  ;;  %v225_v27 = vadd.f32 %v1192_v7, %v154_v19  ;;  %v226_v31 = vadd.f32 %v1192_v7, %v155_v22  ;;  %v227_v32 = vadd.f32 %v1192_v7, %v156_v23 }
   0x8   :  { %v284_v29 = vmax.f32 %v220_v20, 0.0  ;;  %v285_v30 = vmax.f32 %v221_v21, 0.0  ;;  %v286_v34 = vmax.f32 %v222_v24, 0.0  ;;  %v287_v35 = vmax.f32 %v223_v25, 0.0  ;;  %v1100_v25 = vld [vmem:[%s1502_s0 + $0x58] sm:$0xff]  }
   0x9   :  { %v288_v36 = vmax.f32 %v224_v26, 0.0  ;;  %v289_v37 = vmax.f32 %v225_v27, 0.0  ;;  %v290_v40 = vmax.f32 %v226_v31, 0.0  ;;  %v291_v41 = vmax.f32 %v227_v32, 0.0 }
   0xa   :  { %v933_v39 = vpack.c.bf16 %v285_v30, %v284_v29  ;;  %v820_v42 = vunpack.c.l.bf16 %v1093_v28  ;;  %v938_v44 = vpack.c.bf16 %v287_v35, %v286_v34  ;;  %v821_v46 = vunpack.c.h.bf16 %v1093_v28 }
   0xb   :  { %v943_v45 = vpack.c.bf16 %v289_v37, %v288_v36  ;;  %v824_v47 = vunpack.c.l.bf16 %v1094_v33  ;;  %v948_v48 = vpack.c.bf16 %v291_v41, %v290_v40  ;;  %v825_v50 = vunpack.c.h.bf16 %v1094_v33 }
   0xc   :  { %934 = vst [vmem:[%s1505_s3] sm:$0xff] %v933_v39   ;;  %v157_v49 = vmul.f32 %v820_v42, %v1178_v1  ;;  %v828_v51 = vunpack.c.l.bf16 %v1095_v38  ;;  %1121 = vst [vmem:[%s1505_s3 + $0x8] sm:$0xff] %v938_v44   ;;  %v158_v52 = vmul.f32 %v821_v46, %v1178_v1  ;;  %v829_v54 = vunpack.c.h.bf16 %v1095_v38  ;;  %v1101_v38 = vld [vmem:[%s1502_s0 + $0x60] sm:$0xff]  }
   0xd   :  { %1122 = vst [vmem:[%s1505_s3 + $0x10] sm:$0xff] %v943_v45   ;;  %v159_v53 = vmul.f32 %v824_v47, %v1178_v1  ;;  %v832_v55 = vunpack.c.l.bf16 %v1096_v43  ;;  %1123 = vst [vmem:[%s1505_s3 + $0x18] sm:$0xff] %v948_v48   ;;  %v160_v57 = vmul.f32 %v825_v50, %v1178_v1  ;;  %v833_v59 = vunpack.c.h.bf16 %v1096_v43 }
   0xe   :  { %v228_v56 = vadd.f32 %v1192_v7, %v157_v49  ;;  %v161_v58 = vmul.f32 %v828_v51, %v1178_v1  ;;  %v229_v60 = vadd.f32 %v1192_v7, %v158_v52  ;;  %v162_v62 = vmul.f32 %v829_v54, %v1178_v1  ;;  %v1102_v51 = vld [vmem:[%s1502_s0 + $0x68] sm:$0xff]  }
   0xf   :  { %v230_v61 = vadd.f32 %v1192_v7, %v159_v53  ;;  %v163_v63 = vmul.f32 %v832_v55, %v1178_v1  ;;  %v231_v3 = vadd.f32 %v1192_v7, %v160_v57  ;;  %v164_v5 = vmul.f32 %v833_v59, %v1178_v1 }
  0x10   :  { %v292_v2 = vmax.f32 %v228_v56, 0.0  ;;  %v232_v4 = vadd.f32 %v1192_v7, %v161_v58  ;;  %v293_v6 = vmax.f32 %v229_v60, 0.0  ;;  %v233_v9 = vadd.f32 %v1192_v7, %v162_v62  ;;  %v1103_v60 = vld [vmem:[%s1502_s0 + $0x70] sm:$0xff]  }
  0x11   :  { %v294_v8 = vmax.f32 %v230_v61, 0.0  ;;  %v234_v10 = vadd.f32 %v1192_v7, %v163_v63  ;;  %v295_v12 = vmax.f32 %v231_v3, 0.0  ;;  %v235_v14 = vadd.f32 %v1192_v7, %v164_v5 }
  0x12   :  { %v296_v13 = vmax.f32 %v232_v4, 0.0  ;;  %v836_v15 = vunpack.c.l.bf16 %v1097_v0  ;;  %v953_v17 = vpack.c.bf16 %v293_v6, %v292_v2  ;;  %v297_v18 = vmax.f32 %v233_v9, 0.0  ;;  %v1104_v2 = vld [vmem:[%s1502_s0 + $0x78] sm:$0xff]  }
  0x13   :  { %v298_v19 = vmax.f32 %v234_v10, 0.0  ;;  %v837_v20 = vunpack.c.h.bf16 %v1097_v0  ;;  %v958_v21 = vpack.c.bf16 %v295_v12, %v294_v8  ;;  %v299_v22 = vmax.f32 %v235_v14, 0.0  ;;  %v1105_v12 = vld [vmem:[%s1502_s0 + $0x80] sm:$0xff]  }
  0x14   :  { %v165_v23 = vmul.f32 %v836_v15, %v1178_v1  ;;  %v840_v24 = vunpack.c.l.bf16 %v1098_v11  ;;  %1124 = vst [vmem:[%s1505_s3 + $0x20] sm:$0xff] %v953_v17   ;;  %v963_v26 = vpack.c.bf16 %v297_v18, %v296_v13  ;;  %v841_v28 = vunpack.c.h.bf16 %v1098_v11 }
  0x15   :  { %v166_v27 = vmul.f32 %v837_v20, %v1178_v1  ;;  %v844_v29 = vunpack.c.l.bf16 %v1099_v16  ;;  %1125 = vst [vmem:[%s1505_s3 + $0x28] sm:$0xff] %v958_v21   ;;  %v968_v30 = vpack.c.bf16 %v299_v22, %v298_v19  ;;  %v845_v33 = vunpack.c.h.bf16 %v1099_v16 }
  0x16   :  { %v236_v31 = vadd.f32 %v1192_v7, %v165_v23  ;;  %v167_v32 = vmul.f32 %v840_v24, %v1178_v1  ;;  %1126 = vst [vmem:[%s1505_s3 + $0x30] sm:$0xff] %v963_v26   ;;  %v168_v35 = vmul.f32 %v841_v28, %v1178_v1  ;;  %v848_v37 = vunpack.c.l.bf16 %v1100_v25 }
  0x17   :  { %v237_v34 = vadd.f32 %v1192_v7, %v166_v27  ;;  %v169_v36 = vmul.f32 %v844_v29, %v1178_v1  ;;  %1127 = vst [vmem:[%s1505_s3 + $0x38] sm:$0xff] %v968_v30   ;;  %v170_v41 = vmul.f32 %v845_v33, %v1178_v1  ;;  %v849_v42 = vunpack.c.h.bf16 %v1100_v25  ;;  %v1106_v29 = vld [vmem:[%s1502_s0 + $0x88] sm:$0xff]  }
  0x18   :  { %v300_v39 = vmax.f32 %v236_v31, 0.0  ;;  %v238_v40 = vadd.f32 %v1192_v7, %v167_v32  ;;  %v239_v44 = vadd.f32 %v1192_v7, %v168_v35  ;;  %v171_v46 = vmul.f32 %v848_v37, %v1178_v1 }
  0x19   :  { %v301_v43 = vmax.f32 %v237_v34, 0.0  ;;  %v240_v45 = vadd.f32 %v1192_v7, %v169_v36  ;;  %v241_v48 = vadd.f32 %v1192_v7, %v170_v41  ;;  %v172_v49 = vmul.f32 %v849_v42, %v1178_v1  ;;  %v1107_v34 = vld [vmem:[%s1502_s0 + $0x90] sm:$0xff]  }
  0x1a   :  { %v302_v47 = vmax.f32 %v238_v40, 0.0  ;;  %v852_v50 = vunpack.c.l.bf16 %v1101_v38  ;;  %v303_v53 = vmax.f32 %v239_v44, 0.0  ;;  %v242_v55 = vadd.f32 %v1192_v7, %v171_v46 }
  0x1b   :  { %v973_v52 = vpack.c.bf16 %v301_v43, %v300_v39  ;;  %v304_v54 = vmax.f32 %v240_v45, 0.0  ;;  %v305_v56 = vmax.f32 %v241_v48, 0.0  ;;  %v243_v57 = vadd.f32 %v1192_v7, %v172_v49  ;;  %v1108_v43 = vld [vmem:[%s1502_s0 + $0x98] sm:$0xff]  }
  0x1c   :  { %v853_v58 = vunpack.c.h.bf16 %v1101_v38  ;;  %v173_v59 = vmul.f32 %v852_v50, %v1178_v1  ;;  %v978_v61 = vpack.c.bf16 %v303_v53, %v302_v47  ;;  %v306_v62 = vmax.f32 %v242_v55, 0.0 }
  0x1d   :  { %1128 = vst [vmem:[%s1505_s3 + $0x40] sm:$0xff] %v973_v52   ;;  %v856_v63 = vunpack.c.l.bf16 %v1102_v51  ;;  %v857_v0 = vunpack.c.h.bf16 %v1102_v51  ;;  %v983_v3 = vpack.c.bf16 %v305_v56, %v304_v54  ;;  %v307_v4 = vmax.f32 %v243_v57, 0.0  ;;  %v1109_v56 = vld [vmem:[%s1502_s0 + $0xa0] sm:$0xff]  }
  0x1e   :  { %v174_v5 = vmul.f32 %v853_v58, %v1178_v1  ;;  %v244_v6 = vadd.f32 %v1192_v7, %v173_v59  ;;  %1129 = vst [vmem:[%s1505_s3 + $0x48] sm:$0xff] %v978_v61   ;;  %v860_v10 = vunpack.c.l.bf16 %v1103_v60  ;;  %v861_v11 = vunpack.c.h.bf16 %v1103_v60 }
  0x1f   :  { %v175_v8 = vmul.f32 %v856_v63, %v1178_v1  ;;  %v176_v9 = vmul.f32 %v857_v0, %v1178_v1  ;;  %1130 = vst [vmem:[%s1505_s3 + $0x50] sm:$0xff] %v983_v3   ;;  %v988_v13 = vpack.c.bf16 %v307_v4, %v306_v62  ;;  %v864_v16 = vunpack.c.l.bf16 %v1104_v2 }
  0x20   :  { %v245_v14 = vadd.f32 %v1192_v7, %v174_v5  ;;  %v308_v15 = vmax.f32 %v244_v6, 0.0  ;;  %v177_v19 = vmul.f32 %v860_v10, %v1178_v1  ;;  %v178_v20 = vmul.f32 %v861_v11, %v1178_v1 }
  0x21   :  { %v246_v17 = vadd.f32 %v1192_v7, %v175_v8  ;;  %v247_v18 = vadd.f32 %v1192_v7, %v176_v9  ;;  %1131 = vst [vmem:[%s1505_s3 + $0x58] sm:$0xff] %v988_v13   ;;  %v865_v22 = vunpack.c.h.bf16 %v1104_v2  ;;  %v179_v23 = vmul.f32 %v864_v16, %v1178_v1  ;;  %v1110_v2 = vld [vmem:[%s1502_s0 + $0xa8] sm:$0xff]   ;;  %v1111_v16 = vld [vmem:[%s1502_s0 + $0xb0] sm:$0xff]  }
  0x22   :  { %v309_v21 = vmax.f32 %v245_v14, 0.0  ;;  %v868_v24 = vunpack.c.l.bf16 %v1105_v12  ;;  %v248_v27 = vadd.f32 %v1192_v7, %v177_v19  ;;  %v249_v28 = vadd.f32 %v1192_v7, %v178_v20 }
  0x23   :  { %v310_v25 = vmax.f32 %v246_v17, 0.0  ;;  %v311_v26 = vmax.f32 %v247_v18, 0.0  ;;  %v180_v31 = vmul.f32 %v865_v22, %v1178_v1  ;;  %v250_v32 = vadd.f32 %v1192_v7, %v179_v23 }
  0x24   :  { %v993_v30 = vpack.c.bf16 %v309_v21, %v308_v15  ;;  %v869_v33 = vunpack.c.h.bf16 %v1105_v12  ;;  %v312_v36 = vmax.f32 %v248_v27, 0.0  ;;  %v313_v37 = vmax.f32 %v249_v28, 0.0  ;;  %v1112_v21 = vld [vmem:[%s1502_s0 + $0xb8] sm:$0xff]  }
  0x25   :  { %v998_v35 = vpack.c.bf16 %v311_v26, %v310_v25  ;;  %v181_v38 = vmul.f32 %v868_v24, %v1178_v1  ;;  %v251_v39 = vadd.f32 %v1192_v7, %v180_v31  ;;  %v314_v40 = vmax.f32 %v250_v32, 0.0 }
  0x26   :  { %1132 = vst [vmem:[%s1505_s3 + $0x60] sm:$0xff] %v993_v30   ;;  %v182_v41 = vmul.f32 %v869_v33, %v1178_v1  ;;  %v872_v42 = vunpack.c.l.bf16 %v1106_v29  ;;  %v1003_v44 = vpack.c.bf16 %v313_v37, %v312_v36  ;;  %v873_v46 = vunpack.c.h.bf16 %v1106_v29 }
  0x27   :  { %1133 = vst [vmem:[%s1505_s3 + $0x68] sm:$0xff] %v998_v35   ;;  %v252_v45 = vadd.f32 %v1192_v7, %v181_v38  ;;  %v876_v47 = vunpack.c.l.bf16 %v1107_v34  ;;  %v315_v48 = vmax.f32 %v251_v39, 0.0  ;;  %v877_v51 = vunpack.c.h.bf16 %v1107_v34  ;;  %v1113_v34 = vld [vmem:[%s1502_s0 + $0xc0] sm:$0xff]  }
  0x28   :  { %v253_v49 = vadd.f32 %v1192_v7, %v182_v41  ;;  %v183_v50 = vmul.f32 %v872_v42, %v1178_v1  ;;  %1134 = vst [vmem:[%s1505_s3 + $0x70] sm:$0xff] %v1003_v44   ;;  %v184_v53 = vmul.f32 %v873_v46, %v1178_v1  ;;  %v880_v55 = vunpack.c.l.bf16 %v1108_v43 }
  0x29   :  { %v316_v52 = vmax.f32 %v252_v45, 0.0  ;;  %v185_v54 = vmul.f32 %v876_v47, %v1178_v1  ;;  %v1008_v57 = vpack.c.bf16 %v315_v48, %v314_v40  ;;  %v186_v60 = vmul.f32 %v877_v51, %v1178_v1  ;;  %v1114_v47 = vld [vmem:[%s1502_s0 + $0xc8] sm:$0xff]  }
  0x2a   :  { %v317_v58 = vmax.f32 %v253_v49, 0.0  ;;  %v254_v59 = vadd.f32 %v1192_v7, %v183_v50  ;;  %v255_v61 = vadd.f32 %v1192_v7, %v184_v53  ;;  %v881_v63 = vunpack.c.h.bf16 %v1108_v43 }
  0x2b   :  { %v256_v62 = vadd.f32 %v1192_v7, %v185_v54  ;;  %v187_v0 = vmul.f32 %v880_v55, %v1178_v1  ;;  %1135 = vst [vmem:[%s1505_s3 + $0x78] sm:$0xff] %v1008_v57   ;;  %v257_v5 = vadd.f32 %v1192_v7, %v186_v60  ;;  %v884_v6 = vunpack.c.l.bf16 %v1109_v56 }
  0x2c   :  { %v1013_v3 = vpack.c.bf16 %v317_v58, %v316_v52  ;;  %v318_v4 = vmax.f32 %v254_v59, 0.0  ;;  %v319_v8 = vmax.f32 %v255_v61, 0.0  ;;  %v188_v10 = vmul.f32 %v881_v63, %v1178_v1  ;;  %v1115_v52 = vld [vmem:[%s1502_s0 + $0xd0] sm:$0xff]   ;;  %v1116_v61 = vld [vmem:[%s1502_s0 + $0xd8] sm:$0xff]  }
  0x2d   :  { %v320_v9 = vmax.f32 %v256_v62, 0.0  ;;  %v258_v11 = vadd.f32 %v1192_v7, %v187_v0  ;;  %v321_v12 = vmax.f32 %v257_v5, 0.0  ;;  %v885_v13 = vunpack.c.h.bf16 %v1109_v56 }
  0x2e   :  { %1136 = vst [vmem:[%s1505_s3 + $0x80] sm:$0xff] %v1013_v3   ;;  %v189_v14 = vmul.f32 %v884_v6, %v1178_v1  ;;  %v888_v15 = vunpack.c.l.bf16 %v1110_v2  ;;  %v1018_v17 = vpack.c.bf16 %v319_v8, %v318_v4  ;;  %v259_v18 = vadd.f32 %v1192_v7, %v188_v10 }
  0x2f   :  { %v322_v19 = vmax.f32 %v258_v11, 0.0  ;;  %v889_v20 = vunpack.c.h.bf16 %v1110_v2  ;;  %v1023_v22 = vpack.c.bf16 %v321_v12, %v320_v9  ;;  %v190_v23 = vmul.f32 %v885_v13, %v1178_v1  ;;  %v1117_v12 = vld [vmem:[%s1502_s0 + $0xe0] sm:$0xff]  }
  0x30   :  { %v260_v24 = vadd.f32 %v1192_v7, %v189_v14  ;;  %v191_v25 = vmul.f32 %v888_v15, %v1178_v1  ;;  %1137 = vst [vmem:[%s1505_s3 + $0x88] sm:$0xff] %v1018_v17   ;;  %v323_v26 = vmax.f32 %v259_v18, 0.0  ;;  %v892_v28 = vunpack.c.l.bf16 %v1111_v16 }
  0x31   :  { %v192_v27 = vmul.f32 %v889_v20, %v1178_v1  ;;  %v893_v29 = vunpack.c.h.bf16 %v1111_v16  ;;  %1138 = vst [vmem:[%s1505_s3 + $0x90] sm:$0xff] %v1023_v22   ;;  %v261_v30 = vadd.f32 %v1192_v7, %v190_v23  ;;  %v896_v33 = vunpack.c.l.bf16 %v1112_v21 }
  0x32   :  { %v324_v31 = vmax.f32 %v260_v24, 0.0  ;;  %v262_v32 = vadd.f32 %v1192_v7, %v191_v25  ;;  %v1028_v35 = vpack.c.bf16 %v323_v26, %v322_v19  ;;  %v193_v37 = vmul.f32 %v892_v28, %v1178_v1 }
  0x33   :  { %v263_v36 = vadd.f32 %v1192_v7, %v192_v27  ;;  %v194_v38 = vmul.f32 %v893_v29, %v1178_v1  ;;  %v325_v39 = vmax.f32 %v261_v30, 0.0  ;;  %v897_v41 = vunpack.c.h.bf16 %v1112_v21  ;;  %v1118_v21 = vld [vmem:[%s1502_s0 + $0xe8] sm:$0xff]  }
  0x34   :  { %v326_v40 = vmax.f32 %v262_v32, 0.0  ;;  %v195_v42 = vmul.f32 %v896_v33, %v1178_v1  ;;  %1139 = vst [vmem:[%s1505_s3 + $0x98] sm:$0xff] %v1028_v35   ;;  %v264_v44 = vadd.f32 %v1192_v7, %v193_v37  ;;  %v900_v46 = vunpack.c.l.bf16 %v1113_v34 }
  0x35   :  { %v327_v43 = vmax.f32 %v263_v36, 0.0  ;;  %v265_v45 = vadd.f32 %v1192_v7, %v194_v38  ;;  %v1033_v48 = vpack.c.bf16 %v325_v39, %v324_v31  ;;  %v196_v49 = vmul.f32 %v897_v41, %v1178_v1  ;;  %v1120_v39 = vld [vmem:[%s1502_s0 + $0xf8] sm:$0xff]  }
  0x36   :  { %v266_v50 = vadd.f32 %v1192_v7, %v195_v42  ;;  %v901_v51 = vunpack.c.h.bf16 %v1113_v34  ;;  %v328_v54 = vmax.f32 %v264_v44, 0.0  ;;  %v197_v56 = vmul.f32 %v900_v46, %v1178_v1  ;;  %v1119_v34 = vld [vmem:[%s1502_s0 + $0xf0] sm:$0xff]  }
  0x37   :  { %v1038_v53 = vpack.c.bf16 %v327_v43, %v326_v40  ;;  %v329_v55 = vmax.f32 %v265_v45, 0.0  ;;  %1140 = vst [vmem:[%s1505_s3 + $0xa0] sm:$0xff] %v1033_v48   ;;  %v267_v57 = vadd.f32 %v1192_v7, %v196_v49  ;;  %v904_v60 = vunpack.c.l.bf16 %v1114_v47 }
  0x38   :  { %v330_v58 = vmax.f32 %v266_v50, 0.0  ;;  %v198_v59 = vmul.f32 %v901_v51, %v1178_v1  ;;  %v268_v63 = vadd.f32 %v1192_v7, %v197_v56  ;;  %v905_v0 = vunpack.c.h.bf16 %v1114_v47 }
  0x39   :  { %1141 = vst [vmem:[%s1505_s3 + $0xa8] sm:$0xff] %v1038_v53   ;;  %v1043_v62 = vpack.c.bf16 %v329_v55, %v328_v54  ;;  %v908_v2 = vunpack.c.l.bf16 %v1115_v52  ;;  %v331_v3 = vmax.f32 %v267_v57, 0.0  ;;  %v199_v5 = vmul.f32 %v904_v60, %v1178_v1 }
  0x3a   :  { %v269_v4 = vadd.f32 %v1192_v7, %v198_v59  ;;  %v909_v6 = vunpack.c.h.bf16 %v1115_v52  ;;  %v332_v8 = vmax.f32 %v268_v63, 0.0  ;;  %v200_v9 = vmul.f32 %v905_v0, %v1178_v1 }
  0x3b   :  { %1142 = vst [vmem:[%s1505_s3 + $0xb0] sm:$0xff] %v1043_v62   ;;  %v201_v10 = vmul.f32 %v908_v2, %v1178_v1  ;;  %v912_v11 = vunpack.c.l.bf16 %v1116_v61  ;;  %v1048_v13 = vpack.c.bf16 %v331_v3, %v330_v58  ;;  %v270_v15 = vadd.f32 %v1192_v7, %v199_v5 }
  0x3c   :  { %v333_v14 = vmax.f32 %v269_v4, 0.0  ;;  %v202_v16 = vmul.f32 %v909_v6, %v1178_v1  ;;  %v271_v17 = vadd.f32 %v1192_v7, %v200_v9  ;;  %v913_v19 = vunpack.c.h.bf16 %v1116_v61 }
  0x3d   :  { %v272_v18 = vadd.f32 %v1192_v7, %v201_v10  ;;  %v203_v20 = vmul.f32 %v912_v11, %v1178_v1  ;;  %1143 = vst [vmem:[%s1505_s3 + $0xb8] sm:$0xff] %v1048_v13   ;;  %v334_v23 = vmax.f32 %v270_v15, 0.0  ;;  %v916_v25 = vunpack.c.l.bf16 %v1117_v12 }
  0x3e   :  { %v1053_v22 = vpack.c.bf16 %v333_v14, %v332_v8  ;;  %v273_v24 = vadd.f32 %v1192_v7, %v202_v16  ;;  %v335_v26 = vmax.f32 %v271_v17, 0.0  ;;  %v204_v28 = vmul.f32 %v913_v19, %v1178_v1 }
  0x3f   :  { %v336_v27 = vmax.f32 %v272_v18, 0.0  ;;  %v274_v29 = vadd.f32 %v1192_v7, %v203_v20  ;;  %v917_v31 = vunpack.c.h.bf16 %v1117_v12  ;;  %v205_v32 = vmul.f32 %v916_v25, %v1178_v1 }
  0x40   :  { %1144 = vst [vmem:[%s1505_s3 + $0xc0] sm:$0xff] %v1053_v22   ;;  %v337_v30 = vmax.f32 %v273_v24, 0.0  ;;  %v920_v33 = vunpack.c.l.bf16 %v1118_v21  ;;  %v1058_v35 = vpack.c.bf16 %v335_v26, %v334_v23  ;;  %v275_v36 = vadd.f32 %v1192_v7, %v204_v28 }
  0x41   :  { %v338_v37 = vmax.f32 %v274_v29, 0.0  ;;  %v921_v38 = vunpack.c.h.bf16 %v1118_v21  ;;  %v206_v41 = vmul.f32 %v917_v31, %v1178_v1  ;;  %v276_v42 = vadd.f32 %v1192_v7, %v205_v32 }
  0x42   :  { %v1063_v40 = vpack.c.bf16 %v337_v30, %v336_v27  ;;  %v207_v43 = vmul.f32 %v920_v33, %v1178_v1  ;;  %1145 = vst [vmem:[%s1505_s3 + $0xc8] sm:$0xff] %v1058_v35   ;;  %v339_v44 = vmax.f32 %v275_v36, 0.0  ;;  %v924_v46 = vunpack.c.l.bf16 %v1119_v34 }
  0x43   :  { %v208_v45 = vmul.f32 %v921_v38, %v1178_v1  ;;  %v925_v47 = vunpack.c.h.bf16 %v1119_v34  ;;  %v277_v48 = vadd.f32 %v1192_v7, %v206_v41  ;;  %v340_v49 = vmax.f32 %v276_v42, 0.0 }
  0x44   :  { %1146 = vst [vmem:[%s1505_s3 + $0xd0] sm:$0xff] %v1063_v40   ;;  %v278_v50 = vadd.f32 %v1192_v7, %v207_v43  ;;  %v928_v51 = vunpack.c.l.bf16 %v1120_v39  ;;  %v1068_v52 = vpack.c.bf16 %v339_v44, %v338_v37  ;;  %v209_v54 = vmul.f32 %v924_v46, %v1178_v1 }
  0x45   :  { %v279_v53 = vadd.f32 %v1192_v7, %v208_v45  ;;  %v210_v55 = vmul.f32 %v925_v47, %v1178_v1  ;;  %v341_v56 = vmax.f32 %v277_v48, 0.0  ;;  %v929_v58 = vunpack.c.h.bf16 %v1120_v39 }
  0x46   :  { %v342_v57 = vmax.f32 %v278_v50, 0.0  ;;  %v211_v59 = vmul.f32 %v928_v51, %v1178_v1  ;;  %1147 = vst [vmem:[%s1505_s3 + $0xd8] sm:$0xff] %v1068_v52   ;;  %v280_v61 = vadd.f32 %v1192_v7, %v209_v54 }
  0x47   :  { %v343_v60 = vmax.f32 %v279_v53, 0.0  ;;  %v281_v62 = vadd.f32 %v1192_v7, %v210_v55  ;;  %v1073_v63 = vpack.c.bf16 %v341_v56, %v340_v49  ;;  %v212_v0 = vmul.f32 %v929_v58, %v1178_v1 }
  0x48   :  { %v282_v2 = vadd.f32 %v1192_v7, %v211_v59  ;;  %v344_v4 = vmax.f32 %v280_v61, 0.0 }
  0x49   :  { %v1078_v3 = vpack.c.bf16 %v343_v60, %v342_v57  ;;  %v345_v5 = vmax.f32 %v281_v62, 0.0  ;;  %1148 = vst [vmem:[%s1505_s3 + $0xe0] sm:$0xff] %v1073_v63   ;;  %v283_v6 = vadd.f32 %v1192_v7, %v212_v0 }
  0x4a   :  { %v346_v8 = vmax.f32 %v282_v2, 0.0 }
  0x4b   :  { %1149 = vst [vmem:[%s1505_s3 + $0xe8] sm:$0xff] %v1078_v3   ;;  %v1083_v9 = vpack.c.bf16 %v345_v5, %v344_v4  ;;  %v347_v10 = vmax.f32 %v283_v6, 0.0 }
  0x4d   :  { %1150 = vst [vmem:[%s1505_s3 + $0xf0] sm:$0xff] %v1083_v9   ;;  %v1088_v1 = vpack.c.bf16 %v347_v10, %v346_v8 }
  0x4f   :  { %1151 = vst [vmem:[%s1505_s3 + $0xf8] sm:$0xff] %v1088_v1  }

// kernel: double_conv.4
= control target key start
LH: loop header
LB: loop body
LE: loop exit
PB: predicated region body
PF: predicated region fallthrough
CT: control target
= control target key end

     0   :  { %s2683_s15 = smov 0   ;;  %s3263_s0 = inlined_call_operand.vmem [shape: bf16[4,10,18,8], index: 0, kind: input, shape index: {}]   ;;  %s3264_s1 = inlined_call_operand.vmem [shape: bf16[3,3,8,128], index: 1, kind: input, shape index: {}]   ;;  %s3265_s2 = inlined_call_operand.vmem [shape: bf16[4,128,128], index: 2, kind: output, shape index: {0}]   ;;  %s3266_s3 = inlined_call_operand.vmem [shape: f32[4,8,128], index: 3, kind: output, shape index: {1}]   ;;  %s3267_s4 = inlined_call_operand.vmem [shape: f32[4,8,128], index: 4, kind: output, shape index: {2}]  }
   0x1 LB: > { %s2044_s16 = sadd.s32 4294967295, %s2656_s15   ;;  %p2048_p0 = scmp.ge.s32.totalorder %s2656_s15, 1  ;;  %s2656_s15 = sphi %s2683_s15, %s15_s15  }
   0x2   : > { %p167_p1 = scmp.lt.s32.totalorder %s2656_s15, 5 }
   0x4   : > { %p168_p2 = pnand %p2048_p0, %p167_p1 }
   0x5   : > { %v251_v0 = vld [vmem:[%s3264_s1 + $0x4] sm:$0xf] (!%p168_p2)  ;;  %vm503_vm0 = vcmask (!%p168_p2), 1043456   ;;  %v2697_v1 = vld [vmem:[%s3264_s1 + $0x10] sm:$0xf] (!%p168_p2)  ;;  %p201_p3 = scmp.lt.s32.totalorder (!%p168_p2), %s2044_s16, 3 }
   0x6   : > { %171 = sbr.rel (%p168_p2) target bundleno = 402 (0x192), region = 28  ;;  %2621 = vmatprep.subr.msk.bf16.mxu1 (!%p168_p2), %vm503_vm0, %v251_v0  ;;  %2625 = vmatprep.subr.msk.bf16.mxu0 (!%p168_p2), %vm503_vm0, %v2697_v1  ;;  %v505_v2 = vsel (!%p168_p2), %vm503_vm0, %v251_v0, 0  ;;  %v2705_v3 = vsel (!%p168_p2), %vm503_vm0, %v2697_v1, 0  ;;  %v250_v4 = vld [vmem:[%s3264_s1] sm:$0xf] (!%p168_p2)  ;;  %vm478_vm3 = vcmask (!%p168_p2), 64512  }
   0x7   : > { %2330 = vmatpush3.bf16.msra.mxu1 (!%p168_p2), %v505_v2  ;;  %2402 = vmatpush3.bf16.msra.mxu0 (!%p168_p2), %v2705_v3  ;;  %v255_v5 = vld [vmem:[%s3264_s1 + $0x14] sm:$0xf] (!%p168_p2)  ;;  %vm259_vm1 = vsmask.f32 (!%p168_p2), 3328  ;;  %vm260_vm2 = vsmask.f32 (!%p168_p2), 7440 }
   0x8   : > { %2622 = vmatprep.subr.msk.bf16.mxu1 (!%p168_p2), %vm503_vm0, %v250_v4  ;;  %2627 = vmatprep.subr.msk.bf16.mxu0 (!%p168_p2), %vm503_vm0, %v255_v5  ;;  %v2725_v6 = vsel (!%p168_p2), %vm503_vm0, %v250_v4, 0  ;;  %v2751_v18 = vsel (!%p168_p2), %vm503_vm0, %v255_v5, 0  ;;  %v2756_v23 = vld [vmem:[%s3264_s1 + $0x18] sm:$0xf] (!%p168_p2)  ;;  %vm2768_vm4 = vmor (!%p168_p2), %vm259_vm1, %vm260_vm2  ;;  %vm776_vm5 = vcmask (!%p168_p2), 1042432   ;;  %vm777_vm6 = vcmask (!%p168_p2), 1046532  }
   0x9   : > { %v2777_v38 = vsel (!%p168_p2), %vm503_vm0, %v2756_v23, 0  ;;  %vm2851_vm7 = vmor (!%p168_p2), %vm776_vm5, %vm777_vm6 }
   0xd   : > { %s3273_s16 = smov (!%p201_p3, %s2044_s16), 3 }
   0xe   : > { %s2631_s25 = smul.u32 120, %s3273_s16  ;;  %s2184_s13 = sshll.u32 %s3273_s16, 6 }
   0xf   : > { %s3243_s18 = scalar_lea.vmem %s3265_s2, %s2184_s13  ;;  %s2052_s19 = sshll.u32 %s3273_s16, 3 }
  0x10   : > { %s2722_s28 = scalar_lea.vmem %s3263_s0, %s2631_s25  ;;  %s214_s22 = scalar_lea.vmem %s3266_s3, %s2052_s19 }
  0x11   : > { %v2728_v7 = vld [vmem:[%s2722_s28] sm:$0xf]  ;;  %v2731_v8 = vld [vmem:[%s2722_s28 + $0x4] sm:$0xf]  ;;  %v2734_v9 = vld [vmem:[%s2722_s28 + $0x8] sm:$0x1]  ;;  %s218_s25 = scalar_lea.vmem %s3267_s4, %s2052_s19 }
  0x12   : > { %v263_v10 = vshrl.u32 %v2728_v7, 16  ;;  %v266_v11 = vshll.u32 %v2728_v7, 16  ;;  %v272_v12 = vshll.u32 %v2731_v8, 16  ;;  %v276_v13 = vshrl.u32 %v2731_v8, 16  ;;  %v2741_v14 = vld [vmem:[%s2722_s28 + $0xc] sm:$0xf] }
  0x13   : > { %v282_v15 = vshll.u32 %v2734_v9, 16  ;;  %v2745_v16 = vld [vmem:[%s2722_s28 + $0x10] sm:$0xf]  ;;  %v2748_v17 = vld [vmem:[%s2722_s28 + $0x14] sm:$0x1]  ;;  %v287_v25 = vshrl.u32 %v2741_v14, 16 }
  0x14   : > { %v265_v19 = vrot.slane %v263_v10, 4  ;;  %v268_v20 = vrot.slane %v266_v11, 5  ;;  %v274_v21 = vrot.slane %v272_v12, 5  ;;  %v278_v22 = vrot.slane %v276_v13, 4  ;;  %v2764_v32 = vld [vmem:[%s2722_s28 + $0x18] sm:$0xf] }
  0x15   : > { %v284_v24 = vrot.slane %v282_v15, 5  ;;  %v290_v26 = vshll.u32 %v2741_v14, 16  ;;  %v296_v27 = vshll.u32 %v2745_v16, 16  ;;  %v300_v30 = vshrl.u32 %v2745_v16, 16  ;;  %v2773_v37 = vld [vmem:[%s2722_s28 + $0x1c] sm:$0xf] }
  0x16   : > { %v269_v28 = vor.u32 %v268_v20, %v265_v19  ;;  %v279_v29 = vor.u32 %v278_v22, %v274_v21  ;;  %v306_v31 = vshll.u32 %v2748_v17, 16  ;;  %v289_v34 = vrot.slane %v287_v25, 4  ;;  %v2781_v45 = vld [vmem:[%s2722_s28 + $0x20] sm:$0x1]  ;;  %v2791_v56 = vld [vmem:[%s2722_s28 + $0x24] sm:$0xf] }
  0x17   : > { %v292_v35 = vrot.slane %v290_v26, 5  ;;  %v298_v36 = vrot.slane %v296_v27, 5  ;;  %v302_v41 = vrot.slane %v300_v30, 4  ;;  %v791_v44 = vrot.slane %v2748_v17, 5  ;;  %v2796_v61 = vld [vmem:[%s2722_s28 + $0x28] sm:$0xf] }
  0x18   : > { %v270_v39 = vrot.slane %v269_v28, 4  ;;  %v280_v40 = vrot.slane %v279_v29, 4  ;;  %v308_v42 = vrot.slane %v306_v31, 5  ;;  %v311_v46 = vshrl.u32 %v2764_v32, 16  ;;  %v2804_v4 = vld [vmem:[%s2722_s28 + $0x2c] sm:$0x1] }
  0x19   : > { %v293_v43 = vor.u32 %v292_v35, %v289_v34  ;;  %v314_v47 = vshll.u32 %v2764_v32, 16  ;;  %v303_v50 = vor.u32 %v302_v41, %v298_v36  ;;  %v320_v51 = vshll.u32 %v2773_v37, 16  ;;  %v2810_v13 = vld [vmem:[%s2722_s28 + $0x30] sm:$0xf]  ;;  %v2817_v22 = vld [vmem:[%s3264_s1 + $0x8] sm:$0xf] }
  0x1a   : > { %v275_v48 = vsel %vm2768_vm4, %v270_v39, %v274_v21  ;;  %v285_v49 = vsel %vm2768_vm4, %v280_v40, %v284_v24  ;;  %v313_v54 = vrot.slane %v311_v46, 4  ;;  %v324_v59 = vshrl.u32 %v2773_v37, 16  ;;  %v2822_v28 = vld [vmem:[%s2722_s28 + $0x34] sm:$0xf]  ;;  %v2829_v34 = vld [vmem:[%s2722_s28 + $0x38] sm:$0x1] }
  0x1b   : > { %v2054_v52 = vcombine.low %v275_v48, %v285_v49  ;;  %v294_v53 = vrot.slane %v293_v43, 4  ;;  %v316_v55 = vrot.slane %v314_v47, 5  ;;  %v304_v57 = vrot.slane %v303_v50, 4 }
  0x1c   : > { %v322_v58 = vrot.slane %v320_v51, 5  ;;  %v330_v60 = vshll.u32 %v2781_v45, 16  ;;  %v795_v0 = vrot.slane %v2773_v37, 5  ;;  %v798_v2 = vrot.slane %v2781_v45, 5  ;;  %v2842_v51 = vld [vmem:[%s2722_s28 + $0x3c] sm:$0xf] }
  0x1d   : > { %2331 = vmatprep.mubr.msk.bf16.mxu1 %vm478_vm3, %v2054_v52  ;;  %v299_v62 = vsel %vm2768_vm4, %v294_v53, %v298_v36  ;;  %v317_v63 = vor.u32 %v316_v55, %v313_v54  ;;  %v309_v5 = vsel %vm2768_vm4, %v304_v57, %v308_v42  ;;  %v326_v10 = vrot.slane %v324_v59, 4  ;;  %v2847_v57 = vld [vmem:[%s2722_s28 + $0x40] sm:$0xf] }
  0x1e   : > { %v332_v11 = vrot.slane %v330_v60, 5  ;;  %v335_v12 = vshrl.u32 %v2791_v56, 16  ;;  %v2055_v15 = vcombine.low %v299_v62, %v309_v5  ;;  %v338_v20 = vshll.u32 %v2791_v56, 16 }
  0x1f   : > { %v318_v19 = vrot.slane %v317_v63, 4  ;;  %v344_v21 = vshll.u32 %v2796_v61, 16  ;;  %v327_v24 = vor.u32 %v326_v10, %v322_v58  ;;  %v348_v26 = vshrl.u32 %v2796_v61, 16 }
  0x20   : > { %v337_v25 = vrot.slane %v335_v12, 4  ;;  %v354_v27 = vshll.u32 %v2804_v4, 16  ;;  %2403 = vmatprep.mubr.msk.bf16.mxu0 %vm478_vm3, %v2055_v15  ;;  %2332 = vmatmul.mubr.msk.bf16.vlgmr.msra.gmra.mrb[0].mxu1 %vm478_vm3, %v2055_v15  ;;  %v340_v30 = vrot.slane %v338_v20, 5  ;;  %v359_v35 = vshrl.u32 %v2810_v13, 16  ;;  %v2868_v20 = vld [vmem:[%s2722_s28 + $0x44] sm:$0x1] }
  0x21   : > { %v323_v29 = vsel %vm2768_vm4, %v318_v19, %v322_v58  ;;  %v346_v31 = vrot.slane %v344_v21, 5  ;;  %2348 = vmatpush3.bf16.msra.mxu1 %v2725_v6  ;;  %v328_v36 = vrot.slane %v327_v24, 4  ;;  %v350_v39 = vrot.slane %v348_v26, 4 }
  0x22   : > { %v356_v40 = vrot.slane %v354_v27, 5  ;;  %v362_v41 = vshll.u32 %v2810_v13, 16  ;;  %v341_v42 = vor.u32 %v340_v30, %v337_v25  ;;  %v361_v43 = vrot.slane %v359_v35, 4  ;;  %2623 = vmatprep.subr.msk.bf16.mxu1 %vm503_vm0, %v2817_v22 }
  0x23   : > { %v368_v46 = vshll.u32 %v2822_v28, 16  ;;  %v372_v47 = vshrl.u32 %v2822_v28, 16  ;;  %v333_v48 = vsel %vm2768_vm4, %v328_v36, %v332_v11  ;;  %v351_v49 = vor.u32 %v350_v39, %v346_v31  ;;  %v2881_v36 = vld [vmem:[%s2722_s28 + $0x48] sm:$0xf] }
  0x24   : > { %v364_v6 = vrot.slane %v362_v41, 5  ;;  %v378_v50 = vshll.u32 %v2829_v34, 16  ;;  %v2844_v52 = vcombine.low %v323_v29, %v333_v48  ;;  %v342_v53 = vrot.slane %v341_v42, 4  ;;  %v2896_v42 = vld [vmem:[%s2722_s28 + $0x4c] sm:$0xf] }
  0x25   : > { %v370_v54 = vrot.slane %v368_v46, 5  ;;  %v374_v55 = vrot.slane %v372_v47, 4  ;;  %v352_v58 = vrot.slane %v351_v49, 4  ;;  %v2087_v63 = vrot.slane %v2741_v14, 9 }
  0x26   : > { %v365_v59 = vor.u32 %v364_v6, %v361_v43  ;;  %v380_v60 = vrot.slane %v378_v50, 5  ;;  %2404 = vmatmul.mubr.msk.bf16.vlgmr.msra.gmra.mrb[0].mxu0 %vm478_vm3, %v2844_v52  ;;  %2335 = vmatprep.mubr.msk.bf16.mxu1 %vm478_vm3, %v2844_v52  ;;  %v347_v5 = vsel %vm2768_vm4, %v342_v53, %v346_v31  ;;  %v788_v11 = vrot.slane %v2745_v16, 5 }
  0x27   : > { %v375_v10 = vor.u32 %v374_v55, %v370_v54  ;;  %v383_v12 = vshrl.u32 %v2842_v51, 16  ;;  %2420 = vmatpush3.bf16.msra.mxu0 %v2751_v18  ;;  %v357_v15 = vsel %vm2768_vm4, %v352_v58, %v356_v40  ;;  %v386_v21 = vshll.u32 %v2842_v51, 16 }
  0x28   : > { %v366_v19 = vrot.slane %v365_v59, 4  ;;  %v392_v24 = vshll.u32 %v2847_v57, 16  ;;  %v2872_v25 = vcombine.low %v347_v5, %v357_v15  ;;  %v789_v27 = vsel %vm2851_vm7, %v2087_v63, %v788_v11  ;;  %2628 = vmatprep.subr.msk.bf16.mxu0 %vm503_vm0, %v2756_v23 }
  0x29   : > { %v376_v26 = vrot.slane %v375_v10, 4  ;;  %v790_v29 = vrot.slane %v788_v11, 4  ;;  %v385_v30 = vrot.slane %v383_v12, 4  ;;  %v388_v31 = vrot.slane %v386_v21, 5 }
  0x2a   : > { %v371_v18 = vsel %vm2768_vm4, %v366_v19, %v370_v54  ;;  %v394_v35 = vrot.slane %v392_v24, 5  ;;  %2407 = vmatprep.mubr.msk.bf16.mxu0 %vm478_vm3, %v2872_v25  ;;  %2336 = vmatmul.mubr.msk.bf16.gmra.mrb[4].mxu1 %vm478_vm3, %v2872_v25  ;;  %v396_v40 = vshrl.u32 %v2847_v57, 16  ;;  %v402_v41 = vshll.u32 %v2868_v20, 16  ;;  %v2913_v54 = vld [vmem:[%s2722_s28 + $0x50] sm:$0x1] }
  0x2b   : > { %v381_v39 = vsel %vm2768_vm4, %v376_v26, %v380_v60  ;;  %v792_v23 = vsel %vm2851_vm7, %v790_v29, %v791_v44  ;;  %v389_v47 = vor.u32 %v388_v31, %v385_v30  ;;  %v2088_v48 = vrot.slane %v2764_v32, 9  ;;  %v2938_v29 = vld [vmem:[%s2722_s28 + $0x58] sm:$0xf] }
  0x2c   : > { %v2898_v43 = vcombine.low %v371_v18, %v381_v39  ;;  %v2900_v46 = vcombine.low %v789_v27, %v792_v23  ;;  %v398_v49 = vrot.slane %v396_v40, 4  ;;  %v404_v17 = vrot.slane %v402_v41, 5  ;;  %v2944_v39 = vld [vmem:[%s2722_s28 + $0x5c] sm:$0x1] }
  0x2d   : > { %v797_v6 = vrot.slane %v795_v0, 4  ;;  %v407_v44 = vshrl.u32 %v2881_v36, 16  ;;  %v390_v50 = vrot.slane %v389_v47, 4  ;;  %v796_v53 = vsel %vm2851_vm7, %v2088_v48, %v795_v0  ;;  %v2925_v0 = vld [vmem:[%s2722_s28 + $0x54] sm:$0xf] }
  0x2e   : > { %2339 = vmatprep.mubr.msk.bf16.mxu1 %vm478_vm3, %v2898_v43  ;;  %v410_v55 = vshll.u32 %v2881_v36, 16  ;;  %v416_v58 = vshll.u32 %v2896_v42, 16  ;;  %2408 = vmatmul.mubr.msk.bf16.gmra.mrb[4].mxu0 %vm478_vm3, %v2898_v43  ;;  %v399_v59 = vor.u32 %v398_v49, %v394_v35  ;;  %v420_v5 = vshrl.u32 %v2896_v42, 16 }
  0x2f   : > { %v799_v60 = vsel %vm2851_vm7, %v797_v6, %v798_v2  ;;  %v409_v63 = vrot.slane %v407_v44, 4  ;;  %2421 = vmatprep.mubr.msk.bf16.mxu0 %vm478_vm3, %v2900_v46  ;;  %v395_v10 = vsel %vm2768_vm4, %v390_v50, %v394_v35  ;;  %v426_v2 = vshll.u32 %v2913_v54, 16 }
  0x30   : > { %v2931_v11 = vcombine.low %v796_v53, %v799_v60  ;;  %v412_v12 = vrot.slane %v410_v55, 5  ;;  %v418_v45 = vrot.slane %v416_v58, 5  ;;  %v400_v15 = vrot.slane %v399_v59, 4  ;;  %v2963_v58 = vld [vmem:[%s3264_s1 + $0x1c] sm:$0xf] }
  0x31   : > { %v422_v19 = vrot.slane %v420_v5, 4  ;;  %v2089_v21 = vrot.slane %v2791_v56, 9  ;;  %v802_v26 = vrot.slane %v2796_v61, 5  ;;  %v805_v27 = vrot.slane %v2804_v4, 5 }
  0x32   : > { %v413_v24 = vor.u32 %v412_v12, %v409_v63  ;;  %v431_v18 = vshrl.u32 %v2925_v0, 16  ;;  %v405_v30 = vsel %vm2768_vm4, %v400_v15, %v404_v17  ;;  %v428_v35 = vrot.slane %v426_v2, 5 }
  0x33   : > { %v423_v31 = vor.u32 %v422_v19, %v418_v45  ;;  %v434_v23 = vshll.u32 %v2925_v0, 16  ;;  %v2947_v40 = vcombine.low %v395_v10, %v405_v30  ;;  %v803_v47 = vsel %vm2851_vm7, %v2089_v21, %v802_v26 }
  0x34   : > { %v414_v41 = vrot.slane %v413_v24, 4  ;;  %v804_v4 = vrot.slane %v802_v26, 4  ;;  %v433_v49 = vrot.slane %v431_v18, 4  ;;  %v440_v44 = vshll.u32 %v2938_v29, 16 }
  0x35   : > { %v424_v48 = vrot.slane %v423_v31, 4  ;;  %v436_v6 = vrot.slane %v434_v23, 5  ;;  %2340 = vmatmul.mubr.msk.bf16.gmra.mrb[8].mxu1 %vm478_vm3, %v2947_v40  ;;  %v444_v53 = vshrl.u32 %v2938_v29, 16  ;;  %v450_v55 = vshll.u32 %v2944_v39, 16 }
  0x36   : > { %v419_v17 = vsel %vm2768_vm4, %v414_v41, %v418_v45  ;;  %v806_v50 = vsel %vm2851_vm7, %v804_v4, %v805_v27  ;;  %2422 = vmatmul.mubr.msk.bf16.vlgmr.msra.gmra.mrb[0].mxu0 %vm478_vm3, %v2931_v11  ;;  %v442_v5 = vrot.slane %v440_v44, 5  ;;  %v2090_v45 = vrot.slane %v2810_v13, 9 }
  0x37   : > { %v429_v59 = vsel %vm2768_vm4, %v424_v48, %v428_v35  ;;  %v2969_v60 = vcombine.low %v803_v47, %v806_v50  ;;  %v437_v63 = vor.u32 %v436_v6, %v433_v49  ;;  %2438 = vmatpush3.bf16.msra.mxu0 %v2777_v38  ;;  %v446_v12 = vrot.slane %v444_v53, 4  ;;  %v3007_v53 = vld [vmem:[%s2722_s28 + $0x64] sm:$0xf] }
  0x38   : > { %v2972_v10 = vcombine.low %v419_v17, %v429_v59  ;;  %v809_v19 = vrot.slane %v2822_v28, 5  ;;  %v812_v2 = vrot.slane %v2829_v34, 5  ;;  %v2091_v21 = vrot.slane %v2842_v51, 9  ;;  %2629 = vmatprep.subr.msk.bf16.mxu0 %vm503_vm0, %v2963_v58 }
  0x39   : > { %2425 = vmatprep.mubr.msk.bf16.mxu0 %vm478_vm3, %v2969_v60  ;;  %v438_v15 = vrot.slane %v437_v63, 4  ;;  %v447_v38 = vor.u32 %v446_v12, %v442_v5  ;;  %v452_v24 = vrot.slane %v450_v55, 5  ;;  %v816_v26 = vrot.slane %v2847_v57, 5 }
  0x3a   : > { %2343 = vmatprep.mubr.msk.bf16.mxu1 %vm478_vm3, %v2972_v10  ;;  %v819_v27 = vrot.slane %v2868_v20, 5  ;;  %v810_v18 = vsel %vm2851_vm7, %v2090_v45, %v809_v19  ;;  %v811_v30 = vrot.slane %v809_v19, 4  ;;  %v2070_v34 = vcombine.low %v2728_v7, %v2731_v8  ;;  %v3029_v19 = vld [vmem:[%s2722_s28 + $0x68] sm:$0x1] }
  0x3b   : > { %v823_v31 = vrot.slane %v2896_v42, 5  ;;  %v443_v35 = vsel %vm2768_vm4, %v438_v15, %v442_v5  ;;  %v448_v23 = vrot.slane %v447_v38, 4  ;;  %v817_v41 = vsel %vm2851_vm7, %v2091_v21, %v816_v26  ;;  %v3018_v5 = vld [vmem:[%s2722_s28 + $0x60] sm:$0xf] }
  0x3c   : > { %v818_v47 = vrot.slane %v816_v26, 4  ;;  %v813_v20 = vsel %vm2851_vm7, %v811_v30, %v812_v2  ;;  %v2092_v4 = vrot.slane %v2881_v36, 9  ;;  %v826_v49 = vrot.slane %v2913_v54, 5 }
  0x3d   : > { %v825_v48 = vrot.slane %v823_v31, 4  ;;  %v453_v6 = vsel %vm2768_vm4, %v448_v23, %v452_v24  ;;  %v3001_v44 = vcombine.low %v810_v18, %v813_v20  ;;  %v2093_v50 = vrot.slane %v2925_v0, 9  ;;  %v3054_v23 = vld [vmem:[%s2722_s28 + $0x70] sm:$0xf] }
  0x3e   : > { %v820_v17 = vsel %vm2851_vm7, %v818_v47, %v819_v27  ;;  %v3009_v55 = vcombine.low %v443_v35, %v453_v6  ;;  %v830_v63 = vrot.slane %v2938_v29, 5  ;;  %v833_v54 = vrot.slane %v2944_v39, 5 }
  0x3f   : > { %v3011_v59 = vcombine.low %v817_v41, %v820_v17  ;;  %2426 = vmatmul.mubr.msk.bf16.gmra.mrb[4].mxu0 %vm478_vm3, %v3001_v44  ;;  %v824_v12 = vsel %vm2851_vm7, %v2092_v4, %v823_v31  ;;  %v827_v45 = vsel %vm2851_vm7, %v825_v48, %v826_v49  ;;  %v1272_v39 = vrot.slane %v3007_v53, 5  ;;  %v249_v49 = vld [vmem:[%s2722_s28 + $0x74] sm:$0x1] }
  0x40   : > { %2344 = vmatmul.mubr.msk.bf16.gmra.mrb[12].mxu1 %vm478_vm3, %v3009_v55  ;;  %v832_v15 = vrot.slane %v830_v63, 4  ;;  %v831_v2 = vsel %vm2851_vm7, %v2093_v50, %v830_v63  ;;  %v784_v21 = vrot.slane %v2734_v9, 5  ;;  %v2128_v24 = vrot.slane %v3018_v5, 9 }
  0x41   : > { %2429 = vmatprep.mubr.msk.bf16.mxu0 %vm478_vm3, %v3011_v59  ;;  %2349 = vmatprep.mubr.msk.bf16.mxu1 %vm478_vm3, %v2070_v34  ;;  %v2086_v26 = vrot.slane %v2728_v7, 9  ;;  %v3040_v27 = vcombine.low %v824_v12, %v827_v45  ;;  %v1274_v18 = vrot.slane %v1272_v39, 4  ;;  %v1275_v30 = vrot.slane %v3029_v19, 5  ;;  %v3045_v34 = vld [vmem:[%s2722_s28 + $0x6c] sm:$0xf] }
  0x42   : > { %v834_v38 = vsel %vm2851_vm7, %v832_v15, %v833_v54  ;;  %v781_v31 = vrot.slane %v2731_v8, 5  ;;  %v3049_v9 = vcombine.low %v2741_v14, %v2745_v16  ;;  %v1524_v7 = vshrl.u32 %v3045_v34, 16 }
  0x43   : > { %v3051_v35 = vcombine.low %v831_v2, %v834_v38  ;;  %v1527_v41 = vshll.u32 %v3045_v34, 16  ;;  %v3060_v47 = vcombine.low %v2764_v32, %v2773_v37  ;;  %v1537_v4 = vshrl.u32 %v3054_v23, 16  ;;  %v253_v37 = vld [vmem:[%s3264_s1 + $0xc] sm:$0xf] }
  0x44   : > { %v782_v8 = vsel %vm2851_vm7, %v2086_v26, %v781_v31  ;;  %v783_v20 = vrot.slane %v781_v31, 4  ;;  %v884_v14 = vsel %vm503_vm0, %v2817_v22, 0  ;;  %v1273_v16 = vsel %vm2851_vm7, %v2128_v24, %v1272_v39 }
  0x45   : > { %v1276_v48 = vsel %vm2851_vm7, %v1274_v18, %v1275_v30  ;;  %v1526_v6 = vrot.slane %v1524_v7, 4  ;;  %v1529_v17 = vrot.slane %v1527_v41, 5  ;;  %v1533_v63 = vshll.u32 %v3054_v23, 16 }
  0x46   : > { %v785_v32 = vsel %vm2851_vm7, %v783_v20, %v784_v21  ;;  %v1539_v54 = vrot.slane %v1537_v4, 4  ;;  %v3086_v12 = vcombine.low %v1273_v16, %v1276_v48  ;;  %v1543_v45 = vshll.u32 %v249_v49, 16 }
  0x47   : > { %2430 = vmatmul.mubr.msk.bf16.gmra.mrb[8].mxu0 %vm478_vm3, %v3040_v27  ;;  %v2094_v22 = vcombine.low %v782_v8, %v785_v32  ;;  %v1530_v50 = vor.u32 %v1529_v17, %v1526_v6  ;;  %v2156_v15 = vrot.slane %v3045_v34, 9  ;;  %v1535_v2 = vrot.slane %v1533_v63, 5 }
  0x48   : > { %2350 = vmatmul.mubr.msk.bf16.vlgmr.msra.gmra.mrb[0].mxu1 %vm478_vm3, %v3049_v9  ;;  %2433 = vmatprep.mubr.msk.bf16.mxu0 %vm478_vm3, %v3051_v35  ;;  %v1672_v21 = vrot.slane %v3054_v23, 5  ;;  %v1675_v38 = vrot.slane %v249_v49, 5  ;;  %v3093_v24 = vcombine.low %v2791_v56, %v2796_v61  ;;  %v3097_v26 = vcombine.low %v2810_v13, %v2822_v28 }
  0x49   : > { %2366 = vmatpush3.bf16.msra.mxu1 %v884_v14  ;;  %2353 = vmatprep.mubr.msk.bf16.mxu1 %vm478_vm3, %v3060_v47  ;;  %v1531_v39 = vrot.slane %v1530_v50, 4  ;;  %v1545_v18 = vrot.slane %v1543_v45, 5  ;;  %v1540_v31 = vor.u32 %v1539_v54, %v1535_v2  ;;  %v3123_v62 = vcombine.low %v2842_v51, %v2847_v57  ;;  %v258_v14 = vld [vmem:[%s3264_s1 + $0x20] sm:$0xf] }
  0x4a   : > { %2624 = vmatprep.subr.msk.bf16.mxu1 %vm503_vm0, %v253_v37  ;;  %v3103_v7 = vsel %vm2851_vm7, %v2156_v15, %v1672_v21  ;;  %v1674_v41 = vrot.slane %v1672_v21, 4  ;;  %v1554_v20 = vsel %vm503_vm0, %v2963_v58, 0  ;;  %v3129_v4 = vcombine.low %v2881_v36, %v2896_v42 }
  0x4b   : > { %v1536_v30 = vsel %vm2768_vm4, %v1531_v39, %v1535_v2  ;;  %v1541_v8 = vrot.slane %v1540_v31, 4  ;;  %v2077_v51 = vcombine.low %v2925_v0, %v2938_v29  ;;  %v2110_v57 = vcombine.low %v3018_v5, %v3007_v53 }
  0x4c   : > { %v3109_v56 = vsel %vm2851_vm7, %v1674_v41, %v1675_v38  ;;  %v1008_v36 = vsel %vm503_vm0, %v253_v37, 0  ;;  %v2138_v42 = vcombine.low %v3045_v34, %v3054_v23  ;;  %v1127_v0 = vshll.u32 %v3018_v5, 16 }
  0x4d   : > { %v2157_v61 = vcombine.low %v3103_v7, %v3109_v56  ;;  %v1546_v13 = vsel %vm2768_vm4, %v1541_v8, %v1545_v18  ;;  %v1137_v29 = vshrl.u32 %v3007_v53, 16  ;;  %v1684_v58 = vsel %vm503_vm0, %v258_v14, 0 }
  0x4e   : > { %v2147_v28 = vcombine.low %v1536_v30, %v1546_v13  ;;  %v1129_v23 = vrot.slane %v1127_v0, 5 }
  0x4f   : > { %2434 = vmatmul.mubr.msk.bf16.gmra.mrb[12].mxu0 %vm478_vm3, %v3086_v12  ;;  %v1139_v48 = vrot.slane %v1137_v29, 4 }
  0x50   : > { %2354 = vmatmul.mubr.msk.bf16.gmra.mrb[4].mxu1 %vm478_vm3, %v3093_v24  ;;  %2439 = vmatprep.mubr.msk.bf16.mxu0 %vm478_vm3, %v3060_v47 }
  0x51   : > { %2357 = vmatprep.mubr.msk.bf16.mxu1 %vm478_vm3, %v3097_v26 }
  0x57   : > { %2440 = vmatmul.mubr.msk.bf16.vlgmr.msra.gmra.mrb[0].mxu0 %vm478_vm3, %v3093_v24 }
  0x58   : > { %2358 = vmatmul.mubr.msk.bf16.gmra.mrb[8].mxu1 %vm478_vm3, %v3123_v62  ;;  %2456 = vmatpush3.bf16.msra.mxu0 %v1554_v20 }
  0x59   : > { %2361 = vmatprep.mubr.msk.bf16.mxu1 %vm478_vm3, %v3129_v4  ;;  %2443 = vmatprep.mubr.msk.bf16.mxu0 %vm478_vm3, %v3097_v26 }
  0x5a   : > { %2630 = vmatprep.subr.msk.bf16.mxu0 %vm503_vm0, %v258_v14 }
  0x5f   : > { %2444 = vmatmul.mubr.msk.bf16.gmra.mrb[4].mxu0 %vm478_vm3, %v3123_v62 }
  0x60   : > { %2362 = vmatmul.mubr.msk.bf16.gmra.mrb[12].mxu1 %vm478_vm3, %v2077_v51  ;;  %2447 = vmatprep.mubr.msk.bf16.mxu0 %vm478_vm3, %v3129_v4 }
  0x61   : > { %2367 = vmatprep.mubr.msk.bf16.mxu1 %vm478_vm3, %v2094_v22 }
  0x67   : > { %2448 = vmatmul.mubr.msk.bf16.gmra.mrb[8].mxu0 %vm478_vm3, %v2077_v51 }
  0x68   : > { %2368 = vmatmul.mubr.msk.bf16.vlgmr.msra.gmra.mrb[0].mxu1 %vm478_vm3, %v2900_v46  ;;  %2451 = vmatprep.mubr.msk.bf16.mxu0 %vm478_vm3, %v2110_v57  ;;  %v1124_v46 = vshrl.u32 %v3018_v5, 16  ;;  %v1143_v5 = vshll.u32 %v3029_v19, 16 }
  0x69   : > { %2384 = vmatpush3.bf16.msra.mxu1 %v1008_v36  ;;  %2371 = vmatprep.mubr.msk.bf16.mxu1 %vm478_vm3, %v2931_v11 }
  0x6a   : > { %2626 = vmatprep.subr.msk.bf16.mxu1 %vm503_vm0, %v2697_v1  ;;  %v1133_v1 = vshll.u32 %v3007_v53, 16  ;;  %v1126_v34 = vrot.slane %v1124_v46, 4  ;;  %v1145_v49 = vrot.slane %v1143_v5, 5 }
  0x6c   : > { %v1135_v16 = vrot.slane %v1133_v1, 5 }
  0x6e   : > { %v1140_v53 = vor.u32 %v1139_v48, %v1135_v16 }
  0x6f   : > { %2452 = vmatmul.mubr.msk.bf16.gmra.mrb[12].mxu0 %vm478_vm3, %v2138_v42 }
  0x70   : > { %2372 = vmatmul.mubr.msk.bf16.gmra.mrb[4].mxu1 %vm478_vm3, %v2969_v60  ;;  %2457 = vmatprep.mubr.msk.bf16.mxu0 %vm478_vm3, %v2844_v52  ;;  %v1130_v52 = vor.u32 %v1129_v23, %v1126_v34  ;;  %v1141_v37 = vrot.slane %v1140_v53, 4 }
  0x71   : > { %2375 = vmatprep.mubr.msk.bf16.mxu1 %vm478_vm3, %v3001_v44 }
  0x72   : > { %v1131_v32 = vrot.slane %v1130_v52, 4 }
  0x77   : > { %2458 = vmatmul.mubr.msk.bf16.vlgmr.msra.gmra.mrb[0].mxu0 %vm478_vm3, %v2872_v25  ;;  %v1136_v25 = vsel %vm2768_vm4, %v1131_v32, %v1135_v16 }
  0x78   : > { %2376 = vmatmul.mubr.msk.bf16.gmra.mrb[8].mxu1 %vm478_vm3, %v3011_v59  ;;  %2474 = vmatpush3.bf16.msra.mxu0 %v1684_v58 }
  0x79   : > { %2379 = vmatprep.mubr.msk.bf16.mxu1 %vm478_vm3, %v3040_v27  ;;  %2461 = vmatprep.mubr.msk.bf16.mxu0 %vm478_vm3, %v2898_v43  ;;  %v1146_v43 = vsel %vm2768_vm4, %v1141_v37, %v1145_v49 }
  0x7a   : > { %v2119_v19 = vcombine.low %v1136_v25, %v1146_v43 }
  0x7f   : > { %2462 = vmatmul.mubr.msk.bf16.gmra.mrb[4].mxu0 %vm478_vm3, %v2947_v40 }
  0x80   : > { %2380 = vmatmul.mubr.msk.bf16.gmra.mrb[12].mxu1 %vm478_vm3, %v3051_v35  ;;  %2465 = vmatprep.mubr.msk.bf16.mxu0 %vm478_vm3, %v2972_v10 }
  0x81   : > { %2385 = vmatprep.mubr.msk.bf16.mxu1 %vm478_vm3, %v3049_v9 }
  0x87   : > { %2466 = vmatmul.mubr.msk.bf16.gmra.mrb[8].mxu0 %vm478_vm3, %v3009_v55 }
  0x88   : > { %2386 = vmatmul.mubr.msk.bf16.vlgmr.msra.gmra.mrb[0].mxu1 %vm478_vm3, %v3060_v47  ;;  %2469 = vmatprep.mubr.msk.bf16.mxu0 %vm478_vm3, %v2119_v19 }
  0x89   : > { %2492 = vmatpush3.bf16.msra.mxu1 %v2705_v3  ;;  %2389 = vmatprep.mubr.msk.bf16.mxu1 %vm478_vm3, %v3093_v24 }
  0x8f   : > { %2470 = vmatmul.mubr.msk.bf16.gmra.mrb[12].mxu0 %vm478_vm3, %v2147_v28 }
  0x90   : > { %2390 = vmatmul.mubr.msk.bf16.gmra.mrb[4].mxu1 %vm478_vm3, %v3097_v26  ;;  %2475 = vmatprep.mubr.msk.bf16.mxu0 %vm478_vm3, %v2931_v11 }
  0x91   : > { %2393 = vmatprep.mubr.msk.bf16.mxu1 %vm478_vm3, %v3123_v62 }
  0x97   : > { %2476 = vmatmul.mubr.msk.bf16.vlgmr.msra.gmra.mrb[0].mxu0 %vm478_vm3, %v2969_v60 }
  0x98   : > { %2394 = vmatmul.mubr.msk.bf16.gmra.mrb[8].mxu1 %vm478_vm3, %v3129_v4  ;;  %2479 = vmatprep.mubr.msk.bf16.mxu0 %vm478_vm3, %v3001_v44 }
  0x99   : > { %2397 = vmatprep.mubr.msk.bf16.mxu1 %vm478_vm3, %v2077_v51 }
  0x9f   : > { %2480 = vmatmul.mubr.msk.bf16.gmra.mrb[4].mxu0 %vm478_vm3, %v3011_v59 }
  0xa0   : > { %2398 = vmatmul.mubr.msk.bf16.gmra.mrb[12].mxu1 %vm478_vm3, %v2110_v57  ;;  %2483 = vmatprep.mubr.msk.bf16.mxu0 %vm478_vm3, %v3040_v27 }
  0xa1   : > { %2411 = vmatprep.mubr.msk.bf16.mxu1 %vm478_vm3, %v2947_v40 }
  0xa7   : > { %2484 = vmatmul.mubr.msk.bf16.gmra.mrb[8].mxu0 %vm478_vm3, %v3051_v35 }
  0xa8   : > { %2412 = vmatmul.mubr.msk.bf16.vlgmr.msra.gmra.mrb[8].mxu1 %vm478_vm3, %v2972_v10  ;;  %2487 = vmatprep.mubr.msk.bf16.mxu0 %vm478_vm3, %v3086_v12 }
  0xa9   : > { %2415 = vmatprep.mubr.msk.bf16.mxu1 %vm478_vm3, %v3009_v55 }
  0xaf   : > { %2488 = vmatmul.mubr.msk.bf16.gmra.mrb[12].mxu0 %vm478_vm3, %v2157_v61 }
  0xb0   : > { %2416 = vmatmul.mubr.msk.bf16.gmra.mrb[12].mxu1 %vm478_vm3, %v2119_v19 }
 0x15b   : > { %v2387_v3 = vpop.f32.mrb[0].mxu1 }
 0x15c   : > { %v1044_v33 = vpop.f32.mrb[1].mxu1 }
 0x15d   : > { %v2388_v11 = vpop.f32.mrb[2].mxu1 }
 0x15e   : > { %v1047_v40 = vpop.f32.mrb[3].mxu1 }
 0x163   : > { %v2391_v60 = vpop.f32.mrb[4].mxu1 }
 0x164   : > { %v1060_v10 = vpop.f32.mrb[5].mxu1 }
 0x165   : > { %v2392_v44 = vpop.f32.mrb[6].mxu1 }
 0x166   : > { %v1063_v59 = vpop.f32.mrb[7].mxu1 }
 0x16a   : > { %v2477_v27 = vpop.f32.mrb[0].mxu0 }
 0x16b   : > { %v2493_v9 = vadd.f32 %v2477_v27, %v2387_v3  ;;  %v1720_v35 = vpop.f32.mrb[1].mxu0 }
 0x16c   : > { %v2494_v55 = vadd.f32 %v1720_v35, %v1044_v33  ;;  %v2478_v47 = vpop.f32.mrb[2].mxu0 }
 0x16d   : > { %v2495_v6 = vadd.f32 %v2478_v47, %v2388_v11  ;;  %v1723_v17 = vpop.f32.mrb[3].mxu0  ;;  %v1897_v15 = vmul.f32 %v2493_v9, %v2493_v9 }
 0x16e   : > { %v2496_v22 = vadd.f32 %v1723_v17, %v1047_v40  ;;  %v1895_v63 = vmul.f32 %v2494_v55, %v2494_v55 }
 0x16f   : > { %v2209_v50 = vpack.c.bf16 %v2495_v6, %v2493_v9  ;;  %v1898_v26 = vmul.f32 %v2495_v6, %v2495_v6 }
 0x170   : > { %v2204_v54 = vpack.c.bf16 %v2496_v22, %v2494_v55  ;;  %v1879_v12 = vadd.f32 %v2496_v22, %v2494_v55  ;;  %v1896_v45 = vmul.f32 %v2496_v22, %v2496_v22 }
 0x171   : > { %2241 = vst [vmem:[%s3243_s18 + $0x8] sm:$0xff] %v2209_v50  }
 0x172   : > { %2205 = vst [vmem:[%s3243_s18] sm:$0xff] %v2204_v54   ;;  %v1880_v39 = vadd.f32 %v2493_v9, %v1879_v12  ;;  %v1911_v2 = vadd.f32 %v1896_v45, %v1895_v63  ;;  %v2481_v21 = vpop.f32.mrb[4].mxu0 }
 0x173   : > { %v2497_v38 = vadd.f32 %v2481_v21, %v2391_v60  ;;  %v1736_v24 = vpop.f32.mrb[5].mxu0 }
 0x174   : > { %v1912_v18 = vadd.f32 %v1911_v2, %v1897_v15  ;;  %v2498_v30 = vadd.f32 %v1736_v24, %v1060_v10  ;;  %v1881_v31 = vadd.f32 %v2495_v6, %v1880_v39  ;;  %v2482_v7 = vpop.f32.mrb[6].mxu0 }
 0x175   : > { %v2499_v41 = vadd.f32 %v2482_v7, %v2392_v44  ;;  %v1739_v8 = vpop.f32.mrb[7].mxu0  ;;  %v1901_v57 = vmul.f32 %v2497_v38, %v2497_v38 }
 0x176   : > { %v1882_v56 = vadd.f32 %v2498_v30, %v1881_v31  ;;  %v1899_v61 = vmul.f32 %v2498_v30, %v2498_v30  ;;  %v1913_v13 = vadd.f32 %v1912_v18, %v1898_v26  ;;  %v2500_v28 = vadd.f32 %v1739_v8, %v1063_v59 }
 0x177   : > { %v2219_v62 = vpack.c.bf16 %v2499_v41, %v2497_v38  ;;  %v1902_v29 = vmul.f32 %v2499_v41, %v2499_v41 }
 0x178   : > { %v1914_v20 = vadd.f32 %v1913_v13, %v1899_v61  ;;  %v2214_v4 = vpack.c.bf16 %v2500_v28, %v2498_v30  ;;  %v1883_v14 = vadd.f32 %v2500_v28, %v1882_v56  ;;  %v1900_v51 = vmul.f32 %v2500_v28, %v2500_v28 }
 0x179   : > { %2243 = vst [vmem:[%s3243_s18 + $0x18] sm:$0xff] %v2219_v62  }
 0x17a   : > { %2242 = vst [vmem:[%s3243_s18 + $0x10] sm:$0xff] %v2214_v4   ;;  %v1884_v36 = vadd.f32 %v2497_v38, %v1883_v14  ;;  %v1915_v42 = vadd.f32 %v1914_v20, %v1900_v51  ;;  %v2485_v46 = vpop.f32.mrb[8].mxu0 }
 0x17b   : > { %v2413_v0 = vpop.f32.mrb[8].mxu1  ;;  %v1752_v1 = vpop.f32.mrb[9].mxu0 }
 0x17c   : > { %v1916_v58 = vadd.f32 %v1915_v42, %v1901_v57  ;;  %v2501_v34 = vadd.f32 %v2485_v46, %v2413_v0  ;;  %v1222_v23 = vpop.f32.mrb[9].mxu1  ;;  %v1885_v16 = vadd.f32 %v2499_v41, %v1884_v36  ;;  %v2486_v48 = vpop.f32.mrb[10].mxu0 }
 0x17d   : > { %v2502_v52 = vadd.f32 %v1752_v1, %v1222_v23  ;;  %v2414_v53 = vpop.f32.mrb[10].mxu1  ;;  %v1755_v5 = vpop.f32.mrb[11].mxu0 }
 0x17e   : > { %v1917_v32 = vadd.f32 %v1916_v58, %v1902_v29  ;;  %v2503_v37 = vadd.f32 %v2486_v48, %v2414_v53  ;;  %v1225_v49 = vpop.f32.mrb[11].mxu1  ;;  %v1905_v44 = vmul.f32 %v2501_v34, %v2501_v34 }
 0x17f   : > { %v1886_v25 = vadd.f32 %v2502_v52, %v1885_v16  ;;  %v1903_v43 = vmul.f32 %v2502_v52, %v2502_v52  ;;  %v2504_v19 = vadd.f32 %v1755_v5, %v1225_v49 }
 0x180   : > { %v2229_v3 = vpack.c.bf16 %v2503_v37, %v2501_v34  ;;  %v1906_v17 = vmul.f32 %v2503_v37, %v2503_v37 }
 0x181   : > { %v1918_v33 = vadd.f32 %v1917_v32, %v1903_v43  ;;  %v2224_v11 = vpack.c.bf16 %v2504_v19, %v2502_v52  ;;  %v1887_v40 = vadd.f32 %v2504_v19, %v1886_v25  ;;  %v1904_v60 = vmul.f32 %v2504_v19, %v2504_v19 }
 0x182   : > { %2245 = vst [vmem:[%s3243_s18 + $0x28] sm:$0xff] %v2229_v3   ;;  %v2489_v10 = vpop.f32.mrb[12].mxu0 }
 0x183   : > { %2244 = vst [vmem:[%s3243_s18 + $0x20] sm:$0xff] %v2224_v11   ;;  %v1888_v59 = vadd.f32 %v2501_v34, %v1887_v40  ;;  %v1919_v27 = vadd.f32 %v1918_v33, %v1904_v60  ;;  %v2417_v9 = vpop.f32.mrb[12].mxu1  ;;  %v1768_v35 = vpop.f32.mrb[13].mxu0 }
 0x184   : > { %v2505_v55 = vadd.f32 %v2489_v10, %v2417_v9  ;;  %v1238_v47 = vpop.f32.mrb[13].mxu1  ;;  %v2490_v6 = vpop.f32.mrb[14].mxu0 }
 0x185   : > { %v1920_v22 = vadd.f32 %v1919_v27, %v1905_v44  ;;  %v2506_v50 = vadd.f32 %v1768_v35, %v1238_v47  ;;  %v1889_v63 = vadd.f32 %v2503_v37, %v1888_v59  ;;  %v2418_v54 = vpop.f32.mrb[14].mxu1  ;;  %v1771_v12 = vpop.f32.mrb[15].mxu0 }
 0x186   : > { %v2507_v45 = vadd.f32 %v2490_v6, %v2418_v54  ;;  %v1241_v15 = vpop.f32.mrb[15].mxu1  ;;  %v1909_v7 = vmul.f32 %v2505_v55, %v2505_v55 }
 0x187   : > { %v1890_v39 = vadd.f32 %v2506_v50, %v1889_v63  ;;  %v1907_v2 = vmul.f32 %v2506_v50, %v2506_v50  ;;  %v1921_v21 = vadd.f32 %v1920_v22, %v1906_v17  ;;  %v2508_v38 = vadd.f32 %v1771_v12, %v1241_v15 }
 0x188   : > { %v2239_v24 = vpack.c.bf16 %v2507_v45, %v2505_v55  ;;  %v1910_v56 = vmul.f32 %v2507_v45, %v2507_v45 }
 0x189   : > { %v1922_v26 = vadd.f32 %v1921_v21, %v1907_v2  ;;  %v2234_v18 = vpack.c.bf16 %v2508_v38, %v2506_v50  ;;  %v1891_v30 = vadd.f32 %v2508_v38, %v1890_v39  ;;  %v1908_v31 = vmul.f32 %v2508_v38, %v2508_v38 }
 0x18a   : > { %2247 = vst [vmem:[%s3243_s18 + $0x38] sm:$0xff] %v2239_v24  }
 0x18b   : > { %2246 = vst [vmem:[%s3243_s18 + $0x30] sm:$0xff] %v2234_v18   ;;  %v1892_v41 = vadd.f32 %v2505_v55, %v1891_v30  ;;  %v1923_v8 = vadd.f32 %v1922_v26, %v1908_v31 }
 0x18d   : > { %v1893_v61 = vadd.f32 %v2507_v45, %v1892_v41  ;;  %v1924_v13 = vadd.f32 %v1923_v8, %v1909_v7 }
 0x18f   : > { %1894 = vst [vmem:[%s214_s22] sm:$0xff] %v1893_v61  ;;  %v1925_v28 = vadd.f32 %v1924_v13, %v1910_v56 }
 0x191   : > { %1926 = vst [vmem:[%s218_s25] sm:$0xff] %v1925_v28 }
 0x192 PF: > { %s15_s15 = sadd.s32 1, %s2656_s15  }
 0x193   : > { %p12_p4 = scmp.ge.s32.totalorder %s15_s15, 6  }
 0x195   :  { %14 = sbr.rel (!%p12_p4) target bundleno = 1 (0x1), region = 82 }

// kernel: double_conv.6
= control target key start
LH: loop header
LB: loop body
LE: loop exit
PB: predicated region body
PF: predicated region fallthrough
CT: control target
= control target key end

     0   :  { %s3426_s15 = smov 0   ;;  %s4112_s0 = inlined_call_operand.vmem [shape: bf16[4,10,18,128], index: 0, kind: input, shape index: {}]   ;;  %s4113_s1 = inlined_call_operand.vmem [shape: bf16[3,3,128,128], index: 1, kind: input, shape index: {}]   ;;  %s4114_s2 = inlined_call_operand.vmem [shape: bf16[4,128,128], index: 2, kind: output, shape index: {0}]   ;;  %s4115_s3 = inlined_call_operand.vmem [shape: f32[4,8,128], index: 3, kind: output, shape index: {1}]   ;;  %s4116_s4 = inlined_call_operand.vmem [shape: f32[4,8,128], index: 4, kind: output, shape index: {2}]  }
   0x1 LB: > { %s2522_s16 = sadd.s32 4294967295, %s3399_s15   ;;  %p2526_p0 = scmp.ge.s32.totalorder %s3399_s15, 1  ;;  %s3399_s15 = sphi %s3426_s15, %s15_s15  }
   0x2   : > { %p167_p1 = scmp.lt.s32.totalorder %s3399_s15, 5 }
   0x4   : > { %p168_p2 = pnand %p2526_p0, %p167_p1 }
   0x5   : > { %v3311_v0 = vld [vmem:[%s4113_s1 + $0x40] sm:$0xff] (!%p168_p2)   ;;  %p201_p3 = scmp.lt.s32.totalorder (!%p168_p2), %s2522_s16, 3  ;;  %v3313_v2 = vld [vmem:[%s4113_s1 + $0x48] sm:$0xff] (!%p168_p2)   ;;  %v3315_v4 = vld [vmem:[%s4113_s1 + $0x50] sm:$0xff] (!%p168_p2)   ;;  %vm394_vm0 = vsmask.f32 (!%p168_p2), 3328 }
   0x6   : > { %171 = sbr.rel (%p168_p2) target bundleno = 420 (0x1a4), region = 28  ;;  %v3312_v1 = vld [vmem:[%s4113_s1 + $0x100] sm:$0xff] (!%p168_p2)   ;;  %2870 = vmatprep.subr.bf16.mxu1 (!%p168_p2), %v3311_v0  ;;  %v3314_v3 = vld [vmem:[%s4113_s1 + $0x108] sm:$0xff] (!%p168_p2)   ;;  %v3316_v5 = vld [vmem:[%s4113_s1 + $0x110] sm:$0xff] (!%p168_p2)   ;;  %vm395_vm1 = vsmask.f32 (!%p168_p2), 7440 }
   0x7   : > { %2998 = vmatprep.subr.bf16.mxu0 (!%p168_p2), %v3312_v1  ;;  %2871 = vmatpush3.bf16.msra.mxu1 (!%p168_p2), %v3311_v0  ;;  %v3317_v6 = vld [vmem:[%s4113_s1 + $0x58] sm:$0xff] (!%p168_p2)   ;;  %v3319_v8 = vld [vmem:[%s4113_s1 + $0x60] sm:$0xff] (!%p168_p2)   ;;  %v3321_v10 = vld [vmem:[%s4113_s1 + $0x68] sm:$0xff] (!%p168_p2)   ;;  %vm967_vm3 = vcmask (!%p168_p2), 1042432   ;;  %vm968_vm4 = vcmask (!%p168_p2), 1046532  }
   0x8   : > { %2999 = vmatpush3.bf16.msra.mxu0 (!%p168_p2), %v3312_v1  ;;  %2872 = vmatprep.subr.bf16.mxu1 (!%p168_p2), %v3313_v2  ;;  %v3318_v7 = vld [vmem:[%s4113_s1 + $0x118] sm:$0xff] (!%p168_p2)   ;;  %v3320_v9 = vld [vmem:[%s4113_s1 + $0x120] sm:$0xff] (!%p168_p2)   ;;  %v3322_v11 = vld [vmem:[%s4113_s1 + $0x128] sm:$0xff] (!%p168_p2)  }
   0x9   : > { %3000 = vmatprep.subr.bf16.mxu0 (!%p168_p2), %v3314_v3  ;;  %v3323_v17 = vld [vmem:[%s4113_s1 + $0x70] sm:$0xff] (!%p168_p2)   ;;  %v3325_v35 = vld [vmem:[%s4113_s1 + $0x78] sm:$0xff] (!%p168_p2)   ;;  %vm3516_vm2 = vmor (!%p168_p2), %vm394_vm0, %vm395_vm1 }
   0xa   : > { %v3324_v30 = vld [vmem:[%s4113_s1 + $0x130] sm:$0xff] (!%p168_p2)   ;;  %v3326_v51 = vld [vmem:[%s4113_s1 + $0x138] sm:$0xff] (!%p168_p2)   ;;  %v3327_v0 = vld [vmem:[%s4113_s1] sm:$0xff] (!%p168_p2)  }
   0xb   : > { %2873 = vmatpush3.bf16.msra.mxu1 (!%p168_p2), %v3313_v2  ;;  %vm3717_vm5 = vmor (!%p168_p2), %vm967_vm3, %vm968_vm4 }
   0xc   : > { %3001 = vmatpush3.bf16.msra.mxu0 (!%p168_p2), %v3314_v3  ;;  %2874 = vmatprep.subr.bf16.mxu1 (!%p168_p2), %v3315_v4 }
   0xd   : > { %s4122_s16 = smov (!%p201_p3, %s2522_s16), 3  ;;  %3002 = vmatprep.subr.bf16.mxu0 %v3316_v5 }
   0xe   : > { %s3302_s7 = smul.u32 120, %s4122_s16  ;;  %s2662_s25 = sshll.u32 %s4122_s16, 6 }
   0xf   : > { %2875 = vmatpush3.bf16.msra.mxu1 %v3315_v4  ;;  %v3328_v4 = vld [vmem:[%s4113_s1 + $0x140] sm:$0xff]   ;;  %s4064_s28 = scalar_lea.vmem %s4114_s2, %s2662_s25  ;;  %s2530_s29 = sshll.u32 %s4122_s16, 3 }
  0x10   : > { %3003 = vmatpush3.bf16.msra.mxu0 %v3316_v5  ;;  %2876 = vmatprep.subr.bf16.mxu1 %v3317_v6  ;;  %s3470_s14 = scalar_lea.vmem %s4112_s0, %s3302_s7  ;;  %s214_s6 = scalar_lea.vmem %s4115_s3, %s2530_s29 }
  0x11   : > { %3004 = vmatprep.subr.bf16.mxu0 %v3318_v7  ;;  %v3479_v12 = vld [vmem:[%s3470_s14] sm:$0xf]  ;;  %v3482_v13 = vld [vmem:[%s3470_s14 + $0x4] sm:$0xf]  ;;  %v3485_v14 = vld [vmem:[%s3470_s14 + $0x8] sm:$0x1]  ;;  %s218_s16 = scalar_lea.vmem %s4116_s4, %s2530_s29 }
  0x12   : > { %v398_v15 = vshrl.u32 %v3479_v12, 16  ;;  %v401_v16 = vshll.u32 %v3479_v12, 16  ;;  %v407_v18 = vshll.u32 %v3482_v13, 16  ;;  %v411_v19 = vshrl.u32 %v3482_v13, 16  ;;  %v3496_v21 = vld [vmem:[%s3470_s14 + $0xc] sm:$0xf] }
  0x13   : > { %2877 = vmatpush3.bf16.msra.mxu1 %v3317_v6  ;;  %v417_v20 = vshll.u32 %v3485_v14, 16  ;;  %v3499_v24 = vld [vmem:[%s3470_s14 + $0x10] sm:$0xf]  ;;  %v3502_v25 = vld [vmem:[%s3470_s14 + $0x14] sm:$0x1]  ;;  %v422_v29 = vshrl.u32 %v3496_v21, 16 }
  0x14   : > { %3005 = vmatpush3.bf16.msra.mxu0 %v3318_v7  ;;  %2878 = vmatprep.subr.bf16.mxu1 %v3319_v8  ;;  %v400_v22 = vrot.slane %v398_v15, 4  ;;  %v403_v23 = vrot.slane %v401_v16, 5  ;;  %v409_v26 = vrot.slane %v407_v18, 5  ;;  %v413_v27 = vrot.slane %v411_v19, 4  ;;  %v3522_v40 = vld [vmem:[%s3470_s14 + $0x18] sm:$0xf] }
  0x15   : > { %3006 = vmatprep.subr.bf16.mxu0 %v3320_v9  ;;  %v419_v28 = vrot.slane %v417_v20, 5  ;;  %v425_v32 = vshll.u32 %v3496_v21, 16  ;;  %v431_v33 = vshll.u32 %v3499_v24, 16  ;;  %v435_v34 = vshrl.u32 %v3499_v24, 16  ;;  %v3525_v41 = vld [vmem:[%s3470_s14 + $0x1c] sm:$0xf] }
  0x16   : > { %v404_v31 = vor.u32 %v403_v23, %v400_v22  ;;  %v414_v37 = vor.u32 %v413_v27, %v409_v26  ;;  %v424_v38 = vrot.slane %v422_v29, 4  ;;  %v441_v39 = vshll.u32 %v3502_v25, 16  ;;  %v3528_v46 = vld [vmem:[%s3470_s14 + $0x20] sm:$0x1]  ;;  %v3553_v7 = vld [vmem:[%s3470_s14 + $0x24] sm:$0xf] }
  0x17   : > { %2879 = vmatpush3.bf16.msra.mxu1 %v3319_v8  ;;  %v427_v43 = vrot.slane %v425_v32, 5  ;;  %v433_v44 = vrot.slane %v431_v33, 5  ;;  %v437_v45 = vrot.slane %v435_v34, 4  ;;  %v446_v49 = vshrl.u32 %v3522_v40, 16  ;;  %v3556_v8 = vld [vmem:[%s3470_s14 + $0x28] sm:$0xf] }
  0x18   : > { %3007 = vmatpush3.bf16.msra.mxu0 %v3320_v9  ;;  %2880 = vmatprep.subr.bf16.mxu1 %v3321_v10  ;;  %v405_v42 = vrot.slane %v404_v31, 4  ;;  %v415_v47 = vrot.slane %v414_v37, 4  ;;  %v443_v48 = vrot.slane %v441_v39, 5  ;;  %v449_v50 = vshll.u32 %v3522_v40, 16  ;;  %v3559_v9 = vld [vmem:[%s3470_s14 + $0x2c] sm:$0x1] }
  0x19   : > { %3008 = vmatprep.subr.bf16.mxu0 %v3322_v11  ;;  %v428_v53 = vor.u32 %v427_v43, %v424_v38  ;;  %v438_v54 = vor.u32 %v437_v45, %v433_v44  ;;  %v455_v55 = vshll.u32 %v3525_v41, 16  ;;  %v448_v57 = vrot.slane %v446_v49, 4  ;;  %v3569_v23 = vld [vmem:[%s3470_s14 + $0x30] sm:$0xf]  ;;  %v3575_v29 = vld [vmem:[%s3470_s14 + $0x34] sm:$0xf] }
  0x1a   : > { %v410_v52 = vsel %vm3516_vm2, %v405_v42, %v409_v26  ;;  %v420_v56 = vsel %vm3516_vm2, %v415_v47, %v419_v28  ;;  %v451_v58 = vrot.slane %v449_v50, 5  ;;  %v459_v59 = vshrl.u32 %v3525_v41, 16  ;;  %v3330_v37 = vld [vmem:[%s4113_s1 + $0x148] sm:$0xff]   ;;  %v3331_v47 = vld [vmem:[%s4113_s1 + $0x10] sm:$0xff]  }
  0x1b   : > { %2881 = vmatpush3.bf16.msra.mxu1 %v3321_v10  ;;  %v2532_v60 = vcombine.low %v410_v52, %v420_v56  ;;  %v429_v61 = vrot.slane %v428_v53, 4  ;;  %v439_v62 = vrot.slane %v438_v54, 4  ;;  %v457_v63 = vrot.slane %v455_v55, 5  ;;  %v3332_v56 = vld [vmem:[%s4113_s1 + $0x150] sm:$0xff]  }
  0x1c   : > { %3009 = vmatpush3.bf16.msra.mxu0 %v3322_v11  ;;  %2882 = vmatprep.subr.bf16.mxu1 %v3323_v17  ;;  %v452_v1 = vor.u32 %v451_v58, %v448_v57  ;;  %v461_v2 = vrot.slane %v459_v59, 4  ;;  %v465_v3 = vshll.u32 %v3528_v46, 16  ;;  %v470_v18 = vshrl.u32 %v3553_v7, 16 }
  0x1d   : > { %3010 = vmatprep.subr.bf16.mxu0 %v3324_v30  ;;  %2886 = vmatprep.mubr.bf16.mxu1 %v2532_v60  ;;  %v434_v5 = vsel %vm3516_vm2, %v429_v61, %v433_v44  ;;  %v444_v6 = vsel %vm3516_vm2, %v439_v62, %v443_v48  ;;  %v473_v19 = vshll.u32 %v3553_v7, 16  ;;  %v479_v20 = vshll.u32 %v3556_v8, 16  ;;  %v3601_v60 = vld [vmem:[%s3470_s14 + $0x3c] sm:$0xf]  ;;  %v3604_v61 = vld [vmem:[%s3470_s14 + $0x40] sm:$0xf] }
  0x1e   : > { %v2533_v10 = vcombine.low %v434_v5, %v444_v6  ;;  %v453_v11 = vrot.slane %v452_v1, 4  ;;  %v462_v15 = vor.u32 %v461_v2, %v457_v63  ;;  %v467_v16 = vrot.slane %v465_v3, 5  ;;  %v3333_v6 = vld [vmem:[%s4113_s1 + $0x18] sm:$0xff]  }
  0x1f   : > { %2883 = vmatpush3.bf16.msra.mxu1 %v3323_v17  ;;  %v3329_v17 = vld [vmem:[%s4113_s1 + $0x8] sm:$0xff]   ;;  %v483_v22 = vshrl.u32 %v3556_v8, 16  ;;  %v489_v28 = vshll.u32 %v3559_v9, 16  ;;  %v472_v31 = vrot.slane %v470_v18, 4  ;;  %v475_v32 = vrot.slane %v473_v19, 5 }
  0x20   : > { %3011 = vmatpush3.bf16.msra.mxu0 %v3324_v30  ;;  %2884 = vmatprep.subr.bf16.mxu1 %v3325_v35  ;;  %v458_v26 = vsel %vm3516_vm2, %v453_v11, %v457_v63  ;;  %v463_v27 = vrot.slane %v462_v15, 4  ;;  %v3578_v30 = vld [vmem:[%s3470_s14 + $0x38] sm:$0x1]  ;;  %v481_v33 = vrot.slane %v479_v20, 5  ;;  %v494_v39 = vshrl.u32 %v3569_v23, 16 }
  0x21   : > { %3012 = vmatprep.subr.bf16.mxu0 %v3326_v51  ;;  %3014 = vmatprep.mubr.bf16.mxu0 %v2533_v10  ;;  %v485_v34 = vrot.slane %v483_v22, 4  ;;  %v491_v38 = vrot.slane %v489_v28, 5  ;;  %v497_v42 = vshll.u32 %v3569_v23, 16  ;;  %v476_v44 = vor.u32 %v475_v32, %v472_v31  ;;  %v3624_v18 = vld [vmem:[%s3470_s14 + $0x48] sm:$0xf]  ;;  %v3334_v28 = vld [vmem:[%s4113_s1 + $0x158] sm:$0xff]  }
  0x22   : > { %v503_v48 = vshll.u32 %v3575_v29, 16  ;;  %v496_v49 = vrot.slane %v494_v39, 4  ;;  %v513_v52 = vshll.u32 %v3578_v30, 16  ;;  %v518_v1 = vshrl.u32 %v3601_v60, 16 }
  0x23   : > { %2885 = vmatpush3.bf16.msra.mxu1 %v3325_v35  ;;  %v468_v35 = vsel %vm3516_vm2, %v463_v27, %v467_v16  ;;  %v486_v45 = vor.u32 %v485_v34, %v481_v33  ;;  %v499_v50 = vrot.slane %v497_v42, 5  ;;  %v477_v53 = vrot.slane %v476_v44, 4  ;;  %v3633_v27 = vld [vmem:[%s3470_s14 + $0x50] sm:$0x1] }
  0x24   : > { %3013 = vmatpush3.bf16.msra.mxu0 %v3326_v51  ;;  %2902 = vmatprep.subr.bf16.mxu1 %v3327_v0  ;;  %v3587_v43 = vcombine.low %v458_v26, %v468_v35  ;;  %v507_v51 = vshrl.u32 %v3575_v29, 16  ;;  %v505_v55 = vrot.slane %v503_v48, 5  ;;  %v515_v59 = vrot.slane %v513_v52, 5  ;;  %v3630_v26 = vld [vmem:[%s3470_s14 + $0x4c] sm:$0xf] }
  0x25   : > { %3030 = vmatprep.subr.bf16.mxu0 %v3328_v4  ;;  %v487_v54 = vrot.slane %v486_v45, 4  ;;  %v500_v57 = vor.u32 %v499_v50, %v496_v49  ;;  %v482_v62 = vsel %vm3516_vm2, %v477_v53, %v481_v33  ;;  %v521_v2 = vshll.u32 %v3601_v60, 16 }
  0x26   : > { %2887 = vmatmul.mubr.bf16.vlgmr.msra.gmra.mrb[0].mxu1 %v2533_v10  ;;  %v509_v58 = vrot.slane %v507_v51, 4  ;;  %v527_v10 = vshll.u32 %v3604_v61, 16  ;;  %v520_v11 = vrot.slane %v518_v1, 4  ;;  %v531_v16 = vshrl.u32 %v3604_v61, 16 }
  0x27   : > { %2903 = vmatpush3.bf16.msra.mxu1 %v3327_v0  ;;  %3015 = vmatmul.mubr.bf16.vlgmr.msra.gmra.mrb[0].mxu0 %v3587_v43  ;;  %v492_v63 = vsel %vm3516_vm2, %v487_v54, %v491_v38  ;;  %v3611_v0 = vld [vmem:[%s3470_s14 + $0x44] sm:$0x1]  ;;  %v523_v15 = vrot.slane %v521_v2, 5  ;;  %v542_v34 = vshrl.u32 %v3624_v18, 16  ;;  %v545_v38 = vshll.u32 %v3624_v18, 16 }
  0x28   : > { %2904 = vmatprep.subr.bf16.mxu1 %v3329_v17  ;;  %2890 = vmatprep.mubr.bf16.mxu1 %v3587_v43  ;;  %v3615_v3 = vcombine.low %v482_v62, %v492_v63  ;;  %v510_v5 = vor.u32 %v509_v58, %v505_v55  ;;  %v529_v22 = vrot.slane %v527_v10, 5  ;;  %v533_v32 = vrot.slane %v531_v16, 4  ;;  %v3662_v62 = vld [vmem:[%s3470_s14 + $0x58] sm:$0xf]  ;;  %v3665_v63 = vld [vmem:[%s3470_s14 + $0x5c] sm:$0x1] }
  0x29   : > { %3031 = vmatpush3.bf16.msra.mxu0 %v3328_v4  ;;  %v501_v4 = vrot.slane %v500_v57, 4  ;;  %v524_v31 = vor.u32 %v523_v15, %v520_v11  ;;  %v551_v39 = vshll.u32 %v3630_v26, 16  ;;  %v555_v42 = vshrl.u32 %v3630_v26, 16  ;;  %v3658_v57 = vld [vmem:[%s3470_s14 + $0x54] sm:$0xf] }
  0x2a   : > { %3032 = vmatprep.subr.bf16.mxu0 %v3330_v37  ;;  %3018 = vmatprep.mubr.bf16.mxu0 %v3615_v3  ;;  %v511_v20 = vrot.slane %v510_v5, 4  ;;  %v534_v48 = vor.u32 %v533_v32, %v529_v22  ;;  %v544_v49 = vrot.slane %v542_v34, 4  ;;  %v561_v52 = vshll.u32 %v3633_v27, 16 }
  0x2b   : > { %2905 = vmatpush3.bf16.msra.mxu1 %v3329_v17  ;;  %v537_v17 = vshll.u32 %v3611_v0, 16  ;;  %v506_v19 = vsel %vm3516_vm2, %v501_v4, %v505_v55  ;;  %v525_v45 = vrot.slane %v524_v31, 4  ;;  %v553_v50 = vrot.slane %v551_v39, 5  ;;  %v3336_v55 = vld [vmem:[%s4113_s1 + $0x160] sm:$0xff]   ;;  %v3337_v4 = vld [vmem:[%s4113_s1 + $0x28] sm:$0xff]  }
  0x2c   : > { %2906 = vmatprep.subr.bf16.mxu1 %v3331_v47  ;;  %v516_v35 = vsel %vm3516_vm2, %v511_v20, %v515_v59  ;;  %v557_v51 = vrot.slane %v555_v42, 4  ;;  %v535_v54 = vrot.slane %v534_v48, 4  ;;  %v563_v59 = vrot.slane %v561_v52, 5  ;;  %v3698_v39 = vld [vmem:[%s3470_s14 + $0x68] sm:$0x1] }
  0x2d   : > { %3033 = vmatpush3.bf16.msra.mxu0 %v3330_v37  ;;  %v539_v33 = vrot.slane %v537_v17, 5  ;;  %v3335_v37 = vld [vmem:[%s4113_s1 + $0x20] sm:$0xff]   ;;  %v3648_v44 = vcombine.low %v506_v19, %v516_v35  ;;  %v530_v53 = vsel %vm3516_vm2, %v525_v45, %v529_v22  ;;  %v566_v1 = vshrl.u32 %v3658_v57, 16  ;;  %v3338_v17 = vld [vmem:[%s4113_s1 + $0x168] sm:$0xff]   ;;  %v3339_v35 = vld [vmem:[%s4113_s1 + $0x30] sm:$0xff]  }
  0x2e   : > { %2891 = vmatmul.mubr.bf16.gmra.mrb[4].mxu1 %v3615_v3  ;;  %3034 = vmatprep.subr.bf16.mxu0 %v3332_v56  ;;  %v558_v58 = vor.u32 %v557_v51, %v553_v50  ;;  %v569_v5 = vshll.u32 %v3658_v57, 16  ;;  %v579_v10 = vshrl.u32 %v3662_v62, 16  ;;  %v585_v32 = vshll.u32 %v3665_v63, 16  ;;  %v3340_v51 = vld [vmem:[%s4113_s1 + $0x170] sm:$0xff]  }
  0x2f   : > { %2907 = vmatpush3.bf16.msra.mxu1 %v3331_v47  ;;  %v547_v47 = vrot.slane %v545_v38, 5  ;;  %3019 = vmatmul.mubr.bf16.gmra.mrb[4].mxu0 %v3648_v44  ;;  %v540_v2 = vsel %vm3516_vm2, %v535_v54, %v539_v33  ;;  %v568_v19 = vrot.slane %v566_v1, 4  ;;  %v3683_v33 = vld [vmem:[%s3470_s14 + $0x60] sm:$0xf]  ;;  %v3695_v38 = vld [vmem:[%s3470_s14 + $0x64] sm:$0xf] }
  0x30   : > { %2908 = vmatprep.subr.bf16.mxu1 %v3333_v6  ;;  %2894 = vmatprep.mubr.bf16.mxu1 %v3648_v44  ;;  %v3676_v11 = vcombine.low %v530_v53, %v540_v2  ;;  %v559_v16 = vrot.slane %v558_v58, 4  ;;  %v571_v20 = vrot.slane %v569_v5, 5  ;;  %v581_v31 = vrot.slane %v579_v10, 4 }
  0x31   : > { %3035 = vmatpush3.bf16.msra.mxu0 %v3332_v56  ;;  %v548_v56 = vor.u32 %v547_v47, %v544_v49  ;;  %v1387_v42 = vshrl.u32 %v3683_v33, 16  ;;  %v1390_v45 = vshll.u32 %v3683_v33, 16  ;;  %v1396_v54 = vshll.u32 %v3695_v38, 16 }
  0x32   : > { %3036 = vmatprep.subr.bf16.mxu0 %v3334_v28  ;;  %3022 = vmatprep.mubr.bf16.mxu0 %v3676_v11  ;;  %v564_v34 = vsel %vm3516_vm2, %v559_v16, %v563_v59  ;;  %v572_v49 = vor.u32 %v571_v20, %v568_v19  ;;  %v1406_v59 = vshll.u32 %v3698_v39, 16  ;;  %v2565_v1 = vrot.slane %v3496_v21, 9 }
  0x33   : > { %2909 = vmatpush3.bf16.msra.mxu1 %v3333_v6  ;;  %v575_v6 = vshll.u32 %v3662_v62, 16  ;;  %v549_v15 = vrot.slane %v548_v56, 4  ;;  %v1389_v52 = vrot.slane %v1387_v42, 4  ;;  %v1392_v53 = vrot.slane %v1390_v45, 5 }
  0x34   : > { %2910 = vmatprep.subr.bf16.mxu1 %v3335_v37  ;;  %v1400_v56 = vshrl.u32 %v3695_v38, 16  ;;  %v573_v58 = vrot.slane %v572_v49, 4  ;;  %v1408_v19 = vrot.slane %v1406_v59, 5  ;;  %v979_v20 = vrot.slane %v3499_v24, 5 }
  0x35   : > { %3037 = vmatpush3.bf16.msra.mxu0 %v3334_v28  ;;  %v577_v22 = vrot.slane %v575_v6, 5  ;;  %v554_v28 = vsel %vm3516_vm2, %v549_v15, %v553_v50  ;;  %v587_v50 = vrot.slane %v585_v32, 5  ;;  %v1393_v2 = vor.u32 %v1392_v53, %v1389_v52 }
  0x36   : > { %3038 = vmatprep.subr.bf16.mxu0 %v3336_v55  ;;  %2895 = vmatmul.mubr.bf16.gmra.mrb[8].mxu1 %v3676_v11  ;;  %v3702_v48 = vcombine.low %v554_v28, %v564_v34  ;;  %v1402_v5 = vrot.slane %v1400_v56, 4  ;;  %v2548_v6 = vcombine.low %v3479_v12, %v3482_v13  ;;  %v3341_v34 = vld [vmem:[%s4113_s1 + $0x38] sm:$0xff]   ;;  %v980_v42 = vsel %vm3717_vm5, %v2565_v1, %v979_v20 }
  0x37   : > { %2911 = vmatpush3.bf16.msra.mxu1 %v3335_v37  ;;  %v582_v47 = vor.u32 %v581_v31, %v577_v22  ;;  %v578_v15 = vsel %vm3516_vm2, %v573_v58, %v577_v22  ;;  %v1394_v32 = vrot.slane %v1393_v2, 4  ;;  %v3342_v22 = vld [vmem:[%s4113_s1 + $0x178] sm:$0xff]   ;;  %v986_v45 = vrot.slane %v3525_v41, 5 }
  0x38   : > { %2912 = vmatprep.subr.bf16.mxu1 %v3337_v4  ;;  %3023 = vmatmul.mubr.bf16.gmra.mrb[8].mxu0 %v3702_v48  ;;  %v2566_v53 = vrot.slane %v3522_v40, 9  ;;  %v2567_v1 = vrot.slane %v3553_v7, 9  ;;  %v3767_v2 = vcombine.low %v3496_v21, %v3499_v24  ;;  %v3347_v21 = vld [vmem:[%s4113_s1 + $0x88] sm:$0xff]   ;;  %v1000_v24 = vrot.slane %v3575_v29, 5 }
  0x39   : > { %3039 = vmatpush3.bf16.msra.mxu0 %v3336_v55  ;;  %v583_v37 = vrot.slane %v582_v47, 4  ;;  %2898 = vmatprep.mubr.bf16.mxu1 %v3702_v48  ;;  %v1398_v55 = vrot.slane %v1396_v54, 5  ;;  %v988_v58 = vrot.slane %v986_v45, 4 }
  0x3a   : > { %3040 = vmatprep.subr.bf16.mxu0 %v3338_v17 }
  0x3b   : > { %2913 = vmatpush3.bf16.msra.mxu1 %v3337_v4  ;;  %v588_v16 = vsel %vm3516_vm2, %v583_v37, %v587_v50  ;;  %v1403_v28 = vor.u32 %v1402_v5, %v1398_v55  ;;  %v982_v4 = vrot.slane %v3502_v25, 5  ;;  %v1399_v49 = vsel %vm3516_vm2, %v1394_v32, %v1398_v55 }
  0x3c   : > { %v3726_v31 = vcombine.low %v578_v15, %v588_v16  ;;  %2914 = vmatprep.subr.bf16.mxu1 %v3339_v35  ;;  %v3744_v25 = vcombine.low %v3683_v33, %v3695_v38  ;;  %v989_v50 = vrot.slane %v3528_v46, 5  ;;  %v993_v37 = vrot.slane %v3556_v8, 5  ;;  %v3345_v46 = vld [vmem:[%s4113_s1 + $0x80] sm:$0xff]  }
  0x3d   : > { %3041 = vmatpush3.bf16.msra.mxu0 %v3338_v17  ;;  %v981_v17 = vrot.slane %v979_v20, 4  ;;  %v1404_v47 = vrot.slane %v1403_v28, 4  ;;  %v3772_v5 = vcombine.low %v3522_v40, %v3525_v41  ;;  %v1007_v15 = vrot.slane %v3604_v61, 5 }
  0x3e   : > { %3042 = vmatprep.subr.bf16.mxu0 %v3340_v51  ;;  %3026 = vmatprep.mubr.bf16.mxu0 %v3726_v31  ;;  %v995_v55 = vrot.slane %v993_v37, 4  ;;  %v994_v40 = vsel %vm3717_vm5, %v2567_v1, %v993_v37  ;;  %v2568_v20 = vrot.slane %v3569_v23, 9  ;;  %v1002_v28 = vrot.slane %v1000_v24, 4  ;;  %v3354_v37 = vld [vmem:[%s4113_s1 + $0x198] sm:$0xff]  }
  0x3f   : > { %2899 = vmatmul.mubr.bf16.gmra.mrb[12].mxu1 %v3726_v31  ;;  %v983_v52 = vsel %vm3717_vm5, %v981_v17, %v982_v4  ;;  %v1409_v54 = vsel %vm3516_vm2, %v1404_v47, %v1408_v19  ;;  %v3348_v19 = vld [vmem:[%s4113_s1 + $0x188] sm:$0xff]   ;;  %v3351_v4 = vld [vmem:[%s4113_s1 + $0x90] sm:$0xff]   ;;  %v1010_v17 = vrot.slane %v3611_v0, 5  ;;  %v1014_v47 = vrot.slane %v3630_v26, 5  ;;  %v3353_v0 = vld [vmem:[%s4113_s1 + $0x98] sm:$0xff]  }
  0x40   : > { %2915 = vmatpush3.bf16.msra.mxu1 %v3339_v35  ;;  %2918 = vmatprep.mubr.bf16.mxu1 %v2548_v6  ;;  %v3752_v56 = vcombine.low %v980_v42, %v983_v52  ;;  %v3755_v59 = vcombine.low %v1399_v49, %v1409_v54  ;;  %v3346_v35 = vld [vmem:[%s4113_s1 + $0x180] sm:$0xff]   ;;  %v987_v6 = vsel %vm3717_vm5, %v2566_v53, %v986_v45  ;;  %v1009_v42 = vrot.slane %v1007_v15, 4 }
  0x41   : > { %3043 = vmatpush3.bf16.msra.mxu0 %v3340_v51  ;;  %2916 = vmatprep.subr.bf16.mxu1 %v3341_v34  ;;  %v996_v51 = vrot.slane %v3559_v9, 5  ;;  %v990_v9 = vsel %vm3717_vm5, %v988_v58, %v989_v50  ;;  %v3806_v45 = vcombine.low %v3553_v7, %v3556_v8  ;;  %v3814_v49 = vcombine.low %v3569_v23, %v3575_v29 }
  0x42   : > { %3044 = vmatprep.subr.bf16.mxu0 %v3342_v22  ;;  %3027 = vmatmul.mubr.bf16.gmra.mrb[12].mxu0 %v3755_v59  ;;  %v3789_v16 = vcombine.low %v987_v6, %v990_v9  ;;  %v975_v50 = vrot.slane %v3485_v14, 5  ;;  %v1001_v7 = vsel %vm3717_vm5, %v2568_v20, %v1000_v24  ;;  %v1011_v14 = vsel %vm3717_vm5, %v1009_v42, %v1010_v17  ;;  %v3365_v17 = vld [vmem:[%s4113_s1 + $0xb8] sm:$0xff]  }
  0x43   : > { %3046 = vmatprep.mubr.bf16.mxu0 %v3752_v56  ;;  %v997_v41 = vsel %vm3717_vm5, %v995_v55, %v996_v51  ;;  %v1021_v29 = vrot.slane %v3662_v62, 5  ;;  %v2564_v52 = vrot.slane %v3479_v12, 9  ;;  %v2570_v53 = vrot.slane %v3624_v18, 9 }
  0x44   : > { %2917 = vmatpush3.bf16.msra.mxu1 %v3341_v34  ;;  %v3796_v32 = vcombine.low %v994_v40, %v997_v41  ;;  %v1003_v34 = vrot.slane %v3578_v30, 5  ;;  %v3352_v30 = vld [vmem:[%s4113_s1 + $0x190] sm:$0xff]   ;;  %v972_v54 = vrot.slane %v3482_v13, 5  ;;  %v1016_v12 = vrot.slane %v1014_v47, 4 }
  0x45   : > { %3045 = vmatpush3.bf16.msra.mxu0 %v3342_v22  ;;  %2934 = vmatprep.subr.bf16.mxu1 %v3345_v46  ;;  %v2569_v22 = vrot.slane %v3601_v60, 9  ;;  %v2571_v13 = vrot.slane %v3658_v57, 9  ;;  %v1023_v6 = vrot.slane %v1021_v29, 4  ;;  %v1024_v9 = vrot.slane %v3665_v63, 5 }
  0x46   : > { %3062 = vmatprep.subr.bf16.mxu0 %v3346_v35  ;;  %v1004_v8 = vsel %vm3717_vm5, %v1002_v28, %v1003_v34  ;;  %v973_v51 = vsel %vm3717_vm5, %v2564_v52, %v972_v54  ;;  %v974_v55 = vrot.slane %v972_v54, 4  ;;  %v3860_v24 = vcombine.low %v3624_v18, %v3630_v26  ;;  %v3358_v18 = vld [vmem:[%s4113_s1 + $0x1a0] sm:$0xff]   ;;  %v3377_v52 = vld [vmem:[%s4113_s1 + $0xe8] sm:$0xff]  }
  0x47   : > { %2919 = vmatmul.mubr.bf16.vlgmr.msra.gmra.mrb[0].mxu1 %v3767_v2  ;;  %v1008_v23 = vsel %vm3717_vm5, %v2569_v22, %v1007_v15  ;;  %v3835_v58 = vcombine.low %v1001_v7, %v1004_v8  ;;  %v1015_v63 = vsel %vm3717_vm5, %v2570_v53, %v1014_v47  ;;  %v1578_v41 = vrot.slane %v3695_v38, 5  ;;  %v3360_v38 = vld [vmem:[%s4113_s1 + $0x1a8] sm:$0xff]   ;;  %v3363_v22 = vld [vmem:[%s4113_s1 + $0xb0] sm:$0xff]   ;;  %v3367_v47 = vld [vmem:[%s4113_s1 + $0xc0] sm:$0xff]  }
  0x48   : > { %2935 = vmatpush3.bf16.msra.mxu1 %v3345_v46  ;;  %2922 = vmatprep.mubr.bf16.mxu1 %v3772_v5  ;;  %v3357_v46 = vld [vmem:[%s4113_s1 + $0xa0] sm:$0xff]   ;;  %v3845_v1 = vcombine.low %v1008_v23, %v1011_v14  ;;  %v1022_v26 = vsel %vm3717_vm5, %v2571_v13, %v1021_v29  ;;  %v1025_v15 = vsel %vm3717_vm5, %v1023_v6, %v1024_v9  ;;  %v2606_v20 = vrot.slane %v3683_v33, 9  ;;  %v3370_v8 = vld [vmem:[%s4113_s1 + $0x1c8] sm:$0xff]   ;;  %v3372_v23 = vld [vmem:[%s4113_s1 + $0x1d0] sm:$0xff]  }
  0x49   : > { %2936 = vmatprep.subr.bf16.mxu1 %v3347_v21  ;;  %v3886_v28 = vcombine.low %v1022_v26, %v1025_v15  ;;  %v1580_v34 = vrot.slane %v1578_v41, 4  ;;  %v3894_v42 = vcombine.low %v3658_v57, %v3662_v62  ;;  %v3364_v57 = vld [vmem:[%s4113_s1 + $0x1b0] sm:$0xff]   ;;  %v3368_v7 = vld [vmem:[%s4113_s1 + $0x1c0] sm:$0xff]   ;;  %v3374_v14 = vld [vmem:[%s4113_s1 + $0x1d8] sm:$0xff]  }
  0x4a   : > { %3047 = vmatmul.mubr.bf16.vlgmr.msra.gmra.mrb[0].mxu0 %v3789_v16  ;;  %v1579_v33 = vsel %vm3717_vm5, %v2606_v20, %v1578_v41  ;;  %v3375_v29 = vld [vmem:[%s4113_s1 + $0xe0] sm:$0xff]   ;;  %v3378_v54 = vld [vmem:[%s4113_s1 + $0x1e8] sm:$0xff]   ;;  %v3382_v13 = vld [vmem:[%s4113_s1 + $0x1f0] sm:$0xff]  }
  0x4b   : > { %3063 = vmatpush3.bf16.msra.mxu0 %v3346_v35  ;;  %3050 = vmatprep.mubr.bf16.mxu0 %v3796_v32  ;;  %v1017_v35 = vrot.slane %v3633_v27, 5  ;;  %v976_v27 = vsel %vm3717_vm5, %v974_v55, %v975_v50  ;;  %v3369_v50 = vld [vmem:[%s4113_s1 + $0xc8] sm:$0xff]   ;;  %v3376_v53 = vld [vmem:[%s4113_s1 + $0x1e0] sm:$0xff]   ;;  %v3384_v55 = vld [vmem:[%s4113_s1 + $0x1f8] sm:$0xff]  }
  0x4c   : > { %2937 = vmatpush3.bf16.msra.mxu1 %v3347_v21  ;;  %3064 = vmatprep.subr.bf16.mxu0 %v3348_v19  ;;  %v3853_v21 = vcombine.low %v3601_v60, %v3604_v61  ;;  %v2572_v40 = vcombine.low %v973_v51, %v976_v27  ;;  %v3359_v61 = vld [vmem:[%s4113_s1 + $0xa8] sm:$0xff]   ;;  %v3385_v6 = vld [vmem:[%s4113_s1 + $0x200] sm:$0xff]   ;;  %v3387_v9 = vld [vmem:[%s4113_s1 + $0x210] sm:$0xff]  }
  0x4d   : > { %2938 = vmatprep.subr.bf16.mxu1 %v3351_v4  ;;  %v1018_v60 = vsel %vm3717_vm5, %v1016_v12, %v1017_v35  ;;  %v3971_v12 = vld [vmem:[%s3470_s14 + $0x70] sm:$0xf]  ;;  %v3383_v35 = vld [vmem:[%s4113_s1 + $0xf8] sm:$0xff]   ;;  %v249_v41 = vld [vmem:[%s3470_s14 + $0x74] sm:$0x1] }
  0x4e   : > { %v1935_v26 = vshll.u32 %v249_v41, 16 }
  0x4f   : > { %2923 = vmatmul.mubr.bf16.gmra.mrb[4].mxu1 %v3806_v45  ;;  %3065 = vmatpush3.bf16.msra.mxu0 %v3348_v19  ;;  %v3879_v19 = vcombine.low %v1015_v63, %v1018_v60 }
  0x50   : > { %2939 = vmatpush3.bf16.msra.mxu1 %v3351_v4  ;;  %2926 = vmatprep.mubr.bf16.mxu1 %v3814_v49  ;;  %v1581_v4 = vrot.slane %v3698_v39, 5 }
  0x51   : > { %2940 = vmatprep.subr.bf16.mxu1 %v3353_v0  ;;  %3066 = vmatprep.subr.bf16.mxu0 %v3352_v30 }
  0x52   : > { %3051 = vmatmul.mubr.bf16.gmra.mrb[4].mxu0 %v3835_v58  ;;  %v1582_v39 = vsel %vm3717_vm5, %v1580_v34, %v1581_v4  ;;  %v3392_v34 = vld [vmem:[%s4113_s1 + $0x238] sm:$0xff]  }
  0x53   : > { %3067 = vmatpush3.bf16.msra.mxu0 %v3352_v30  ;;  %3054 = vmatprep.mubr.bf16.mxu0 %v3845_v1  ;;  %v3909_v62 = vcombine.low %v1579_v33, %v1582_v39  ;;  %v3366_v30 = vld [vmem:[%s4113_s1 + $0x1b8] sm:$0xff]  }
  0x54   : > { %2941 = vmatpush3.bf16.msra.mxu1 %v3353_v0  ;;  %3068 = vmatprep.subr.bf16.mxu0 %v3354_v37  ;;  %v3371_v0 = vld [vmem:[%s4113_s1 + $0xd0] sm:$0xff]  }
  0x55   : > { %2942 = vmatprep.subr.bf16.mxu1 %v3357_v46 }
  0x57   : > { %2927 = vmatmul.mubr.bf16.gmra.mrb[8].mxu1 %v3853_v21  ;;  %3069 = vmatpush3.bf16.msra.mxu0 %v3354_v37  ;;  %v3380_v37 = vld [vmem:[%s4113_s1 + $0xf0] sm:$0xff]  }
  0x58   : > { %2943 = vmatpush3.bf16.msra.mxu1 %v3357_v46  ;;  %2930 = vmatprep.mubr.bf16.mxu1 %v3860_v24  ;;  %v3968_v46 = vld [vmem:[%s3470_s14 + $0x6c] sm:$0xf] }
  0x59   : > { %2944 = vmatprep.subr.bf16.mxu1 %v3359_v61  ;;  %3070 = vmatprep.subr.bf16.mxu0 %v3358_v18  ;;  %v2616_v51 = vcombine.low %v3968_v46, %v3971_v12  ;;  %v1919_v27 = vshll.u32 %v3968_v46, 16  ;;  %v2634_v36 = vrot.slane %v3968_v46, 9 }
  0x5a   : > { %3055 = vmatmul.mubr.bf16.gmra.mrb[8].mxu0 %v3879_v19 }
  0x5b   : > { %3071 = vmatpush3.bf16.msra.mxu0 %v3358_v18  ;;  %3058 = vmatprep.mubr.bf16.mxu0 %v3886_v28  ;;  %v1921_v63 = vrot.slane %v1919_v27, 5 }
  0x5c   : > { %2945 = vmatpush3.bf16.msra.mxu1 %v3359_v61  ;;  %3072 = vmatprep.subr.bf16.mxu0 %v3360_v38  ;;  %v3389_v61 = vld [vmem:[%s4113_s1 + $0x220] sm:$0xff]  }
  0x5d   : > { %2946 = vmatprep.subr.bf16.mxu1 %v3363_v22 }
  0x5f   : > { %2931 = vmatmul.mubr.bf16.gmra.mrb[12].mxu1 %v3894_v42  ;;  %3073 = vmatpush3.bf16.msra.mxu0 %v3360_v38  ;;  %v1937_v38 = vrot.slane %v1935_v26, 5 }
  0x60   : > { %2947 = vmatpush3.bf16.msra.mxu1 %v3363_v22  ;;  %2950 = vmatprep.mubr.bf16.mxu1 %v2572_v40  ;;  %v1929_v40 = vshrl.u32 %v3971_v12, 16  ;;  %v2110_v22 = vrot.slane %v249_v41, 5 }
  0x61   : > { %2948 = vmatprep.subr.bf16.mxu1 %v3365_v17  ;;  %3074 = vmatprep.subr.bf16.mxu0 %v3364_v57 }
  0x62   : > { %3059 = vmatmul.mubr.bf16.gmra.mrb[12].mxu0 %v3909_v62 }
  0x63   : > { %3075 = vmatpush3.bf16.msra.mxu0 %v3364_v57  ;;  %3078 = vmatprep.mubr.bf16.mxu0 %v3772_v5 }
  0x64   : > { %2949 = vmatpush3.bf16.msra.mxu1 %v3365_v17  ;;  %3076 = vmatprep.subr.bf16.mxu0 %v3366_v30 }
  0x65   : > { %2966 = vmatprep.subr.bf16.mxu1 %v3367_v47 }
  0x67   : > { %2951 = vmatmul.mubr.bf16.vlgmr.msra.gmra.mrb[0].mxu1 %v3752_v56  ;;  %3077 = vmatpush3.bf16.msra.mxu0 %v3366_v30  ;;  %v3373_v56 = vld [vmem:[%s4113_s1 + $0xd8] sm:$0xff]  }
  0x68   : > { %2967 = vmatpush3.bf16.msra.mxu1 %v3367_v47  ;;  %2954 = vmatprep.mubr.bf16.mxu1 %v3789_v16 }
  0x69   : > { %2968 = vmatprep.subr.bf16.mxu1 %v3369_v50  ;;  %3094 = vmatprep.subr.bf16.mxu0 %v3368_v7 }
  0x6a   : > { %3079 = vmatmul.mubr.bf16.vlgmr.msra.gmra.mrb[0].mxu0 %v3806_v45 }
  0x6b   : > { %3095 = vmatpush3.bf16.msra.mxu0 %v3368_v7  ;;  %3082 = vmatprep.mubr.bf16.mxu0 %v3814_v49 }
  0x6c   : > { %2969 = vmatpush3.bf16.msra.mxu1 %v3369_v50  ;;  %3096 = vmatprep.subr.bf16.mxu0 %v3370_v8 }
  0x6d   : > { %2970 = vmatprep.subr.bf16.mxu1 %v3371_v0 }
  0x6f   : > { %2955 = vmatmul.mubr.bf16.gmra.mrb[4].mxu1 %v3796_v32  ;;  %3097 = vmatpush3.bf16.msra.mxu0 %v3370_v8 }
  0x70   : > { %2971 = vmatpush3.bf16.msra.mxu1 %v3371_v0  ;;  %2958 = vmatprep.mubr.bf16.mxu1 %v3835_v58 }
  0x71   : > { %2972 = vmatprep.subr.bf16.mxu1 %v3373_v56  ;;  %3098 = vmatprep.subr.bf16.mxu0 %v3372_v23 }
  0x72   : > { %3083 = vmatmul.mubr.bf16.gmra.mrb[4].mxu0 %v3853_v21 }
  0x73   : > { %3099 = vmatpush3.bf16.msra.mxu0 %v3372_v23  ;;  %3086 = vmatprep.mubr.bf16.mxu0 %v3860_v24 }
  0x74   : > { %2973 = vmatpush3.bf16.msra.mxu1 %v3373_v56  ;;  %3100 = vmatprep.subr.bf16.mxu0 %v3374_v14 }
  0x75   : > { %2974 = vmatprep.subr.bf16.mxu1 %v3375_v29 }
  0x77   : > { %2959 = vmatmul.mubr.bf16.gmra.mrb[8].mxu1 %v3845_v1  ;;  %3101 = vmatpush3.bf16.msra.mxu0 %v3374_v14 }
  0x78   : > { %2975 = vmatpush3.bf16.msra.mxu1 %v3375_v29  ;;  %2962 = vmatprep.mubr.bf16.mxu1 %v3879_v19 }
  0x79   : > { %2976 = vmatprep.subr.bf16.mxu1 %v3377_v52  ;;  %3102 = vmatprep.subr.bf16.mxu0 %v3376_v53 }
  0x7a   : > { %3087 = vmatmul.mubr.bf16.gmra.mrb[8].mxu0 %v3894_v42 }
  0x7b   : > { %3103 = vmatpush3.bf16.msra.mxu0 %v3376_v53  ;;  %3090 = vmatprep.mubr.bf16.mxu0 %v3744_v25 }
  0x7c   : > { %2977 = vmatpush3.bf16.msra.mxu1 %v3377_v52  ;;  %3104 = vmatprep.subr.bf16.mxu0 %v3378_v54 }
  0x7d   : > { %2978 = vmatprep.subr.bf16.mxu1 %v3380_v37 }
  0x7f   : > { %2963 = vmatmul.mubr.bf16.gmra.mrb[12].mxu1 %v3886_v28  ;;  %3105 = vmatpush3.bf16.msra.mxu0 %v3378_v54 }
  0x80   : > { %2979 = vmatpush3.bf16.msra.mxu1 %v3380_v37  ;;  %2982 = vmatprep.mubr.bf16.mxu1 %v3767_v2  ;;  %v3386_v2 = vld [vmem:[%s4113_s1 + $0x208] sm:$0xff]  }
  0x81   : > { %2980 = vmatprep.subr.bf16.mxu1 %v3383_v35  ;;  %3106 = vmatprep.subr.bf16.mxu0 %v3382_v13 }
  0x82   : > { %3091 = vmatmul.mubr.bf16.gmra.mrb[12].mxu0 %v2616_v51 }
  0x83   : > { %3107 = vmatpush3.bf16.msra.mxu0 %v3382_v13  ;;  %3110 = vmatprep.mubr.bf16.mxu0 %v3587_v43  ;;  %v1916_v43 = vshrl.u32 %v3968_v46, 16 }
  0x84   : > { %2981 = vmatpush3.bf16.msra.mxu1 %v3383_v35  ;;  %3108 = vmatprep.subr.bf16.mxu0 %v3384_v55 }
  0x85   : > { %3158 = vmatprep.subr.bf16.mxu1 %v3385_v6 }
  0x87   : > { %2983 = vmatmul.mubr.bf16.vlgmr.msra.gmra.mrb[0].mxu1 %v3772_v5  ;;  %3109 = vmatpush3.bf16.msra.mxu0 %v3384_v55  ;;  %v3388_v5 = vld [vmem:[%s4113_s1 + $0x218] sm:$0xff]  }
  0x88   : > { %3166 = vmatpush3.bf16.msra.mxu1 %v3385_v6  ;;  %2986 = vmatprep.mubr.bf16.mxu1 %v3806_v45  ;;  %v1925_v45 = vshll.u32 %v3971_v12, 16 }
  0x89   : > { %3159 = vmatprep.subr.bf16.mxu1 %v3386_v2  ;;  %3126 = vmatprep.subr.bf16.mxu0 %v3385_v6 }
  0x8a   : > { %3111 = vmatmul.mubr.bf16.vlgmr.msra.gmra.mrb[0].mxu0 %v3615_v3  ;;  %v1918_v3 = vrot.slane %v1916_v43, 4  ;;  %v1927_v60 = vrot.slane %v1925_v45, 5 }
  0x8b   : > { %3127 = vmatpush3.bf16.msra.mxu0 %v3385_v6  ;;  %3114 = vmatprep.mubr.bf16.mxu0 %v3648_v44  ;;  %v1931_v44 = vrot.slane %v1929_v40, 4 }
  0x8c   : > { %3167 = vmatpush3.bf16.msra.mxu1 %v3386_v2  ;;  %3128 = vmatprep.subr.bf16.mxu0 %v3386_v2 }
  0x8d   : > { %3160 = vmatprep.subr.bf16.mxu1 %v3387_v9  ;;  %v1932_v18 = vor.u32 %v1931_v44, %v1927_v60 }
  0x8f   : > { %2987 = vmatmul.mubr.bf16.gmra.mrb[4].mxu1 %v3814_v49  ;;  %3129 = vmatpush3.bf16.msra.mxu0 %v3386_v2  ;;  %v3390_v49 = vld [vmem:[%s4113_s1 + $0x228] sm:$0xff]   ;;  %v1933_v15 = vrot.slane %v1932_v18, 4 }
  0x90   : > { %3168 = vmatpush3.bf16.msra.mxu1 %v3387_v9  ;;  %2990 = vmatprep.mubr.bf16.mxu1 %v3853_v21  ;;  %v1922_v21 = vor.u32 %v1921_v63, %v1918_v3 }
  0x91   : > { %3161 = vmatprep.subr.bf16.mxu1 %v3388_v5  ;;  %3130 = vmatprep.subr.bf16.mxu0 %v3387_v9  ;;  %v1938_v20 = vsel %vm3516_vm2, %v1933_v15, %v1937_v38 }
  0x92   : > { %3115 = vmatmul.mubr.bf16.gmra.mrb[4].mxu0 %v3676_v11  ;;  %v1923_v11 = vrot.slane %v1922_v21, 4 }
  0x93   : > { %3131 = vmatpush3.bf16.msra.mxu0 %v3387_v9  ;;  %3118 = vmatprep.mubr.bf16.mxu0 %v3702_v48  ;;  %v3391_v48 = vld [vmem:[%s4113_s1 + $0x230] sm:$0xff]  }
  0x94   : > { %3169 = vmatpush3.bf16.msra.mxu1 %v3388_v5  ;;  %3132 = vmatprep.subr.bf16.mxu0 %v3388_v5 }
  0x95   : > { %3162 = vmatprep.subr.bf16.mxu1 %v3389_v61 }
  0x97   : > { %2991 = vmatmul.mubr.bf16.gmra.mrb[8].mxu1 %v3860_v24  ;;  %3133 = vmatpush3.bf16.msra.mxu0 %v3388_v5  ;;  %v1928_v24 = vsel %vm3516_vm2, %v1923_v11, %v1927_v60 }
  0x98   : > { %3170 = vmatpush3.bf16.msra.mxu1 %v3389_v61  ;;  %2994 = vmatprep.mubr.bf16.mxu1 %v3894_v42  ;;  %v2625_v4 = vcombine.low %v1928_v24, %v1938_v20 }
  0x99   : > { %3163 = vmatprep.subr.bf16.mxu1 %v3390_v49  ;;  %3134 = vmatprep.subr.bf16.mxu0 %v3389_v61 }
  0x9a   : > { %3119 = vmatmul.mubr.bf16.gmra.mrb[8].mxu0 %v3726_v31  ;;  %v2107_v31 = vrot.slane %v3971_v12, 5 }
  0x9b   : > { %3135 = vmatpush3.bf16.msra.mxu0 %v3389_v61  ;;  %3122 = vmatprep.mubr.bf16.mxu0 %v3755_v59 }
  0x9c   : > { %3171 = vmatpush3.bf16.msra.mxu1 %v3390_v49  ;;  %3136 = vmatprep.subr.bf16.mxu0 %v3390_v49  ;;  %v2109_v59 = vrot.slane %v2107_v31, 4 }
  0x9d   : > { %3164 = vmatprep.subr.bf16.mxu1 %v3391_v48 }
  0x9f   : > { %2995 = vmatmul.mubr.bf16.gmra.mrb[12].mxu1 %v3744_v25  ;;  %3137 = vmatpush3.bf16.msra.mxu0 %v3390_v49  ;;  %v2108_v25 = vsel %vm3717_vm5, %v2634_v36, %v2107_v31 }
  0xa0   : > { %3172 = vmatpush3.bf16.msra.mxu1 %v3391_v48  ;;  %3150 = vmatprep.mubr.bf16.mxu1 %v3879_v19  ;;  %v2111_v19 = vsel %vm3717_vm5, %v2109_v59, %v2110_v22 }
  0xa1   : > { %3165 = vmatprep.subr.bf16.mxu1 %v3392_v34  ;;  %3138 = vmatprep.subr.bf16.mxu0 %v3391_v48  ;;  %v2635_v42 = vcombine.low %v2108_v25, %v2111_v19 }
  0xa2   : > { %3123 = vmatmul.mubr.bf16.gmra.mrb[12].mxu0 %v2625_v4 }
  0xa3   : > { %3139 = vmatpush3.bf16.msra.mxu0 %v3391_v48  ;;  %3142 = vmatprep.mubr.bf16.mxu0 %v3789_v16 }
  0xa4   : > { %3173 = vmatpush3.bf16.msra.mxu1 %v3392_v34  ;;  %3140 = vmatprep.subr.bf16.mxu0 %v3392_v34 }
  0xa7   : > { %3151 = vmatmul.mubr.bf16.vlgmr.msra.gmra.mrb[16].mxu1 %v3886_v28  ;;  %3141 = vmatpush3.bf16.msra.mxu0 %v3392_v34 }
  0xa8   : > { %3154 = vmatprep.mubr.bf16.mxu1 %v3909_v62 }
  0xaa   : > { %3143 = vmatmul.mubr.bf16.vlgmr.msra.gmra.mrb[0].mxu0 %v3796_v32 }
  0xab   : > { %3146 = vmatprep.mubr.bf16.mxu0 %v3835_v58 }
  0xaf   : > { %3155 = vmatmul.mubr.bf16.gmra.mrb[20].mxu1 %v2635_v42 }
  0xb2   : > { %3147 = vmatmul.mubr.bf16.gmra.mrb[4].mxu0 %v3845_v1 }
 0x15a   : > { %v2984_v16 = vpop.f32.mrb[0].mxu1 }
 0x15b   : > { %v1307_v33 = vpop.f32.mrb[1].mxu1 }
 0x15c   : > { %v2985_v28 = vpop.f32.mrb[2].mxu1 }
 0x15d   : > { %v1310_v39 = vpop.f32.mrb[3].mxu1 }
 0x162   : > { %v4046_v17 = vpop.f32.mrb[4].mxu1 }
 0x163   : > { %v4048_v57 = vpop.f32.mrb[5].mxu1 }
 0x164   : > { %v4050_v62 = vpop.f32.mrb[6].mxu1 }
 0x165   : > { %v4052_v10 = vpop.f32.mrb[7].mxu1 }
 0x16a   : > { %v2992_v30 = vpop.f32.mrb[8].mxu1 }
 0x16b   : > { %v1339_v47 = vpop.f32.mrb[9].mxu1 }
 0x16c   : > { %v2993_v32 = vpop.f32.mrb[10].mxu1 }
 0x16d   : > { %v1342_v50 = vpop.f32.mrb[11].mxu1  ;;  %v3120_v58 = vpop.f32.mrb[8].mxu0 }
 0x16e   : > { %v3182_v7 = vadd.f32 %v3120_v58, %v2992_v30  ;;  %v2057_v8 = vpop.f32.mrb[9].mxu0 }
 0x16f   : > { %v3184_v1 = vadd.f32 %v2057_v8, %v1339_v47  ;;  %v3121_v0 = vpop.f32.mrb[10].mxu0 }
 0x170   : > { %v3186_v56 = vadd.f32 %v3121_v0, %v2993_v32  ;;  %v2060_v23 = vpop.f32.mrb[11].mxu0 }
 0x171   : > { %v3188_v29 = vadd.f32 %v2060_v23, %v1342_v50 }
 0x172   : > { %v2996_v14 = vpop.f32.mrb[12].mxu1 }
 0x173   : > { %v1355_v52 = vpop.f32.mrb[13].mxu1 }
 0x174   : > { %v2997_v53 = vpop.f32.mrb[14].mxu1 }
 0x175   : > { %v1358_v54 = vpop.f32.mrb[15].mxu1  ;;  %v3124_v37 = vpop.f32.mrb[12].mxu0 }
 0x176   : > { %v3190_v46 = vadd.f32 %v3124_v37, %v2996_v14  ;;  %v2073_v12 = vpop.f32.mrb[13].mxu0 }
 0x177   : > { %v3192_v35 = vadd.f32 %v2073_v12, %v1355_v52  ;;  %v3125_v13 = vpop.f32.mrb[14].mxu0 }
 0x178   : > { %v3194_v51 = vadd.f32 %v3125_v13, %v2997_v53  ;;  %v2076_v55 = vpop.f32.mrb[15].mxu0 }
 0x179   : > { %v3196_v2 = vadd.f32 %v2076_v55, %v1358_v54 }
 0x17a   : > { %v3152_v6 = vpop.f32.mrb[16].mxu1 }
 0x17b   : > { %v4054_v9 = vadd.f32 %v3182_v7, %v3152_v6  ;;  %v2230_v43 = vpop.f32.mrb[17].mxu1 }
 0x17c   : > { %v4057_v27 = vadd.f32 %v3184_v1, %v2230_v43  ;;  %v3153_v40 = vpop.f32.mrb[18].mxu1 }
 0x17d   : > { %v4059_v5 = vadd.f32 %v3186_v56, %v3153_v40  ;;  %v2233_v45 = vpop.f32.mrb[19].mxu1  ;;  %v3144_v63 = vpop.f32.mrb[0].mxu0 }
 0x17e   : > { %v4066_v3 = vadd.f32 %v3188_v29, %v2233_v45  ;;  %v3174_v44 = vadd.f32 %v3144_v63, %v2984_v16  ;;  %v2198_v61 = vpop.f32.mrb[1].mxu0  ;;  %v2381_v55 = vmul.f32 %v4057_v27, %v4057_v27  ;;  %v2383_v45 = vmul.f32 %v4054_v9, %v4054_v9 }
 0x17f   : > { %v2707_v60 = vpack.c.bf16 %v4059_v5, %v4054_v9  ;;  %v3175_v49 = vadd.f32 %v2198_v61, %v1307_v33  ;;  %v3145_v21 = vpop.f32.mrb[2].mxu0 }
 0x180   : > { %v2702_v41 = vpack.c.bf16 %v4066_v3, %v4057_v27  ;;  %v3176_v18 = vadd.f32 %v3145_v21, %v2985_v28  ;;  %v2201_v26 = vpop.f32.mrb[3].mxu0  ;;  %v2375_v42 = vmul.f32 %v3174_v44, %v3174_v44 }
 0x181   : > { %2723 = vst [vmem:[%s4064_s28 + $0x28] sm:$0xff] %v2707_v60   ;;  %v3177_v15 = vadd.f32 %v2201_v26, %v1310_v39  ;;  %v2373_v4 = vmul.f32 %v3175_v49, %v3175_v49 }
 0x182   : > { %2722 = vst [vmem:[%s4064_s28 + $0x20] sm:$0xff] %v2702_v41   ;;  %v3156_v11 = vpop.f32.mrb[20].mxu1  ;;  %v2687_v24 = vpack.c.bf16 %v3176_v18, %v3174_v44  ;;  %v2376_v50 = vmul.f32 %v3176_v18, %v3176_v18 }
 0x183   : > { %v4074_v38 = vadd.f32 %v3190_v46, %v3156_v11  ;;  %v2246_v48 = vpop.f32.mrb[21].mxu1  ;;  %v2682_v31 = vpack.c.bf16 %v3177_v15, %v3175_v49  ;;  %v2357_v36 = vadd.f32 %v3177_v15, %v3175_v49  ;;  %v2374_v59 = vmul.f32 %v3177_v15, %v3177_v15 }
 0x184   : > { %v3193_v20 = vadd.f32 %v3192_v35, %v2246_v48  ;;  %v3157_v34 = vpop.f32.mrb[22].mxu1  ;;  %2719 = vst [vmem:[%s4064_s28 + $0x8] sm:$0xff] %v2687_v24  }
 0x185   : > { %v2249_v22 = vpop.f32.mrb[23].mxu1  ;;  %v3195_v25 = vadd.f32 %v3194_v51, %v3157_v34  ;;  %2683 = vst [vmem:[%s4064_s28] sm:$0xff] %v2682_v31   ;;  %v2358_v16 = vadd.f32 %v3174_v44, %v2357_v36  ;;  %v2389_v33 = vadd.f32 %v2374_v59, %v2373_v4  ;;  %v3148_v28 = vpop.f32.mrb[4].mxu0  ;;  %v2384_v44 = vmul.f32 %v4059_v5, %v4059_v5 }
 0x186   : > { %v3197_v19 = vadd.f32 %v3196_v2, %v2249_v22  ;;  %v3178_v39 = vadd.f32 %v3148_v28, %v4046_v17  ;;  %v2214_v30 = vpop.f32.mrb[5].mxu0  ;;  %v2382_v2 = vmul.f32 %v4066_v3, %v4066_v3 }
 0x187   : > { %v2717_v47 = vpack.c.bf16 %v3195_v25, %v4074_v38  ;;  %v2390_v58 = vadd.f32 %v2389_v33, %v2375_v42  ;;  %v3179_v7 = vadd.f32 %v2214_v30, %v4048_v57  ;;  %v2359_v8 = vadd.f32 %v3176_v18, %v2358_v16  ;;  %v3149_v1 = vpop.f32.mrb[6].mxu0 }
 0x188   : > { %v2712_v32 = vpack.c.bf16 %v3197_v19, %v3193_v20  ;;  %v3180_v0 = vadd.f32 %v3149_v1, %v4050_v62  ;;  %v2217_v56 = vpop.f32.mrb[7].mxu0  ;;  %v2379_v57 = vmul.f32 %v3178_v39, %v3178_v39  ;;  %v2386_v26 = vmul.f32 %v3197_v19, %v3197_v19 }
 0x189   : > { %2725 = vst [vmem:[%s4064_s28 + $0x38] sm:$0xff] %v2717_v47   ;;  %v2360_v23 = vadd.f32 %v3179_v7, %v2359_v8  ;;  %v2377_v14 = vmul.f32 %v3179_v7, %v3179_v7  ;;  %v2391_v17 = vadd.f32 %v2390_v58, %v2376_v50  ;;  %v3181_v29 = vadd.f32 %v2217_v56, %v4052_v10 }
 0x18a   : > { %2724 = vst [vmem:[%s4064_s28 + $0x30] sm:$0xff] %v2712_v32   ;;  %v2697_v52 = vpack.c.bf16 %v3180_v0, %v3178_v39  ;;  %v2380_v13 = vmul.f32 %v3180_v0, %v3180_v0  ;;  %v2388_v48 = vmul.f32 %v3195_v25, %v3195_v25 }
 0x18b   : > { %v2392_v53 = vadd.f32 %v2391_v17, %v2377_v14  ;;  %v2692_v54 = vpack.c.bf16 %v3181_v29, %v3179_v7  ;;  %v2361_v37 = vadd.f32 %v3181_v29, %v2360_v23  ;;  %v2378_v46 = vmul.f32 %v3181_v29, %v3181_v29 }
 0x18c   : > { %2721 = vst [vmem:[%s4064_s28 + $0x18] sm:$0xff] %v2697_v52  }
 0x18d   : > { %2720 = vst [vmem:[%s4064_s28 + $0x10] sm:$0xff] %v2692_v54   ;;  %v2362_v12 = vadd.f32 %v3178_v39, %v2361_v37  ;;  %v2393_v35 = vadd.f32 %v2392_v53, %v2378_v46 }
 0x18f   : > { %v2363_v62 = vadd.f32 %v3180_v0, %v2362_v12  ;;  %v2394_v51 = vadd.f32 %v2393_v35, %v2379_v57 }
 0x191   : > { %v2364_v6 = vadd.f32 %v4057_v27, %v2363_v62  ;;  %v2395_v10 = vadd.f32 %v2394_v51, %v2380_v13  ;;  %v2385_v27 = vmul.f32 %v3193_v20, %v3193_v20 }
 0x193   : > { %v2396_v43 = vadd.f32 %v2395_v10, %v2381_v55  ;;  %v2365_v40 = vadd.f32 %v4066_v3, %v2364_v6  ;;  %v2387_v3 = vmul.f32 %v4074_v38, %v4074_v38 }
 0x195   : > { %v2366_v63 = vadd.f32 %v4054_v9, %v2365_v40  ;;  %v2397_v60 = vadd.f32 %v2396_v43, %v2382_v2 }
 0x197   : > { %v2367_v61 = vadd.f32 %v4059_v5, %v2366_v63  ;;  %v2398_v41 = vadd.f32 %v2397_v60, %v2383_v45 }
 0x199   : > { %v2368_v49 = vadd.f32 %v3193_v20, %v2367_v61  ;;  %v2399_v21 = vadd.f32 %v2398_v41, %v2384_v44 }
 0x19b   : > { %v2369_v18 = vadd.f32 %v3197_v19, %v2368_v49  ;;  %v2400_v11 = vadd.f32 %v2399_v21, %v2385_v27 }
 0x19d   : > { %v2370_v15 = vadd.f32 %v4074_v38, %v2369_v18  ;;  %v2401_v9 = vadd.f32 %v2400_v11, %v2386_v26 }
 0x19f   : > { %v2371_v5 = vadd.f32 %v3195_v25, %v2370_v15  ;;  %v2402_v24 = vadd.f32 %v2401_v9, %v2387_v3 }
 0x1a1   : > { %2372 = vst [vmem:[%s214_s6] sm:$0xff] %v2371_v5  ;;  %v2403_v20 = vadd.f32 %v2402_v24, %v2388_v48 }
 0x1a3   : > { %2404 = vst [vmem:[%s218_s16] sm:$0xff] %v2403_v20 }
 0x1a4 PF: > { %s15_s15 = sadd.s32 1, %s3399_s15  }
 0x1a5   : > { %p12_p4 = scmp.ge.s32.totalorder %s15_s15, 6  }
 0x1a7   :  { %14 = sbr.rel (!%p12_p4) target bundleno = 1 (0x1), region = 82 }

</bundles_post_ra>
